<compile_context>
chip_gen: v5e
topology: v5e:2x2
jax: 0.10.0
libtpu: 0.0.40
codegen_flags: <defaults>
</compile_context>

<pallas_src>
import jax
import jax.numpy as jnp
from jax.experimental import pallas as pl
from jax.experimental.pallas import tpu as pltpu

_VMEM = pl.BlockSpec(memory_space=pltpu.MemorySpace.VMEM)
_EPS = 1e-5


# ----------------------------------------------------------------------------
# Fused kernel: conv1->conv2->conv3->conv4->flatten->fc1->fc2->classifier
# ----------------------------------------------------------------------------
def fused_forward_kernel(
        x_ref,
        w1_ref, s1_ref, w2_ref, s2_ref, w3_ref, s3_ref, w4_ref, s4_ref,
        fw1_ref, fb1_ref, fw2_ref, fb2_ref, fw3_ref, fb3_ref,
        o_ref,
        cols_ref, flat_ref):
    """Whole ConvNet_1D forward in a single kernel invocation.

    x_ref    : (B, L0, C0) f32       channels-last input (C = conv channels)
    wN_ref   : (3*Cin_N, Cout_N) bf16 im2col conv weight, BN scale folded in
    sN_ref   : (1, Cout_N) f32        folded conv-bias / BN shift
    fwK/fbK  : fc weights (in, out) f32 / biases (1, out) f32; fc1 rows are
               pre-permuted so the channels-last flatten matches PyTorch's
               reshape of a (B, C, L) tensor.
    o_ref    : (B, num_classes) f32
    cols_ref : (>= B*L0, >= 3*max(Cin)) f32 VMEM scratch for im2col
    flat_ref : (B, flat_dim) f32 VMEM scratch for the flatten
    """
    B = x_ref.shape[0]

    # Per-sample activations as channels-last 2-D tiles (VMEM-resident values).
    acts = [x_ref[b] for b in range(B)]

    conv_layers = ((w1_ref, s1_ref), (w2_ref, s2_ref),
                   (w3_ref, s3_ref), (w4_ref, s4_ref))
    for w_ref, s_ref in conv_layers:
        L, Cin = acts[0].shape

        # ---- im2col (K=3, padding='same') built in VMEM scratch -------------
        # cols[b*L + l, t*Cin + c] = x_b[l + t - 1, c], zero outside [0, L).
        zrow = jnp.zeros((1, Cin), dtype=cols_ref.dtype)
        for b in range(B):
            h = acts[b]
            r = b * L
            cols_ref[r:r + 1, 0:Cin] = zrow                        # tap 0, l = 0
            cols_ref[r + 1:r + L, 0:Cin] = h[0:L - 1, :]           # tap 0
            cols_ref[r:r + L, Cin:2 * Cin] = h                     # tap 1
            cols_ref[r:r + L - 1, 2 * Cin:3 * Cin] = h[1:L, :]     # tap 2
            cols_ref[r + L - 1:r + L, 2 * Cin:3 * Cin] = zrow      # tap 2, l = L-1

        cols = cols_ref[0:B * L, 0:3 * Cin].astype(jnp.bfloat16)

        # ---- Conv1d as ONE MXU matmul (batch folded into M) + BN + ReLU -----
        y = jnp.dot(cols, w_ref[...], preferred_element_type=jnp.float32)
        y = jnp.maximum(y + s_ref[...], 0.0)

        # ---- MaxPool1d(kernel_size=2, stride=1), per sample ------------------
        acts = [jnp.maximum(y[b * L:(b + 1) * L - 1, :],
                            y[b * L + 1:(b + 1) * L, :]) for b in range(B)]

    # ---- flatten in (l, c) order, matching the permuted fc1 weight ----------
    L4, C4 = acts[0].shape
    for b in range(B):
        h = acts[b]
        for l in range(L4):
            flat_ref[b:b + 1, l * C4:(l + 1) * C4] = h[l:l + 1, :]

    # ---- fc1 -> fc2 -> classifier (dropouts are identity in eval mode) ------
    f = flat_ref[...]
    h1 = jnp.dot(f, fw1_ref[...], preferred_element_type=jnp.float32) + fb1_ref[...]
    h2 = jnp.dot(h1, fw2_ref[...], preferred_element_type=jnp.float32) + fb2_ref[...]
    o_ref[...] = (jnp.dot(h2, fw3_ref[...], preferred_element_type=jnp.float32)
                  + fb3_ref[...]).astype(o_ref.dtype)


# ----------------------------------------------------------------------------
# One-time parameter preparation (BN folding, im2col reshape, fc1 permutation)
# ----------------------------------------------------------------------------
def prepare_params(params):
    """Fold eval-mode BatchNorm + conv bias into the weights and pre-permute fc1.

    Run once outside the hot path.  Conv weights are cast to bf16 (fp32
    accumulation happens inside the kernel); shifts / FC stay fp32.
    """
    conv = []
    for (w, b, gamma, beta, mean, var) in params["conv"]:
        Cout, Cin, K = w.shape
        assert K == 3, "kernel is specialized for kernel_size=3 / padding=1"
        scale = gamma / jnp.sqrt(var + _EPS)                            # (Cout,)
        w_mat = jnp.transpose(w, (2, 1, 0)).reshape(K * Cin, Cout)      # row = t*Cin+ci
        w_mat = (w_mat * scale[None, :]).astype(jnp.bfloat16)
        shift = ((b - mean) * scale + beta).reshape(1, Cout).astype(jnp.float32)
        conv.append((w_mat, shift))

    (w1, b1), (w2, b2), (w3, b3) = params["fc"]
    C_last = params["conv"][-1][0].shape[0]      # Cout of last conv (32)
    L_last = w1.shape[1] // C_last               # pooled length (5)
    # PyTorch flattens (B, C, L) -> index c*L + l; the kernel flattens the
    # channels-last (L, C) tile -> index l*C + c.  Permute fc1's input rows so
    # the activation never needs a transpose/reshape.
    w1p = jnp.transpose(w1.reshape(w1.shape[0], C_last, L_last), (2, 1, 0))
    w1p = w1p.reshape(L_last * C_last, w1.shape[0])
    fc = [(w1p.astype(jnp.float32), b1.reshape(1, -1).astype(jnp.float32)),
          (w2.T.astype(jnp.float32), b2.reshape(1, -1).astype(jnp.float32)),
          (w3.T.astype(jnp.float32), b3.reshape(1, -1).astype(jnp.float32))]
    return {"conv": conv, "fc": fc}


# ----------------------------------------------------------------------------
# Forward wrapper: one transpose of the tiny input + a single pallas_call
# ----------------------------------------------------------------------------
def convnet_1d_forward(prepared, x_ncl):
    """x_ncl: (B, num_timesteps, num_features), same layout as the PyTorch module."""
    convs, fcs = prepared["conv"], prepared["fc"]
    assert len(convs) == 4 and len(fcs) == 3

    # Channels-last so the large channel axis maps to the 128-wide lane dim.
    x = jnp.transpose(x_ncl, (0, 2, 1)).astype(jnp.float32)     # (B, L0, C0)
    B, L0, _ = x.shape
    num_classes = fcs[-1][0].shape[1]
    flat_dim = fcs[0][0].shape[0]
    cols_rows = ((B * L0 + 7) // 8) * 8                         # sublane-aligned
    cols_lanes = max(w.shape[0] for w, _ in convs)              # 3 * max(Cin)

    args = [x]
    for w, s in convs:
        args += [w, s]
    for w, b in fcs:
        args += [w, b]

    return pl.pallas_call(
        fused_forward_kernel,
        out_shape=jax.ShapeDtypeStruct((B, num_classes), jnp.float32),
        in_specs=[_VMEM] * len(args),
        out_specs=_VMEM,
        scratch_shapes=[pltpu.VMEM((cols_rows, cols_lanes), jnp.float32),
                        pltpu.VMEM((B, flat_dim), jnp.float32)],
    )(*args)


# ----------------------------------------------------------------------------
# Deterministic parameter init (PyTorch-default-style uniform bounds)
# ----------------------------------------------------------------------------
def _uniform(key, shape, bound):
    return jax.random.uniform(key, shape, jnp.float32, -bound, bound)


def init_params(key, kernel_size=3, num_classes=6, num_timesteps=128,
                num_features=9):
    nch = 256
    conv_dims = [(num_timesteps, nch), (nch, nch // 2),
                 (nch // 2, nch // 4), (nch // 4, nch // 8)]
    keys = iter(jax.random.split(key, 16))

    conv_layers = []
    for cin, cout in conv_dims:
        bound = 1.0 / (cin * kernel_size) ** 0.5
        w = _uniform(next(keys), (cout, cin, kernel_size), bound)
        b = _uniform(next(keys), (cout,), bound)
        gamma = jnp.ones((cout,), jnp.float32)    # PyTorch BatchNorm defaults
        beta = jnp.zeros((cout,), jnp.float32)
        mean = jnp.zeros((cout,), jnp.float32)
        var = jnp.ones((cout,), jnp.float32)
        conv_layers.append((w, b, gamma, beta, mean, var))

    feat = nch // 8 * (num_features - 4)
    fc_dims = [(feat, num_classes * 3),
               (num_classes * 3, num_classes * 2),
               (num_classes * 2, num_classes)]
    fcs = []
    for fin, fout in fc_dims:
        bound = 1.0 / fin ** 0.5
        w = _uniform(next(keys), (fout, fin), bound)
        b = _uniform(next(keys), (fout,), bound)
        fcs.append((w, b))

    return {"conv": conv_layers, "fc": fcs}


# ----------------------------------------------------------------------------
# Pure-JAX fp32 reference (the PyTorch spec, for the correctness check)
# ----------------------------------------------------------------------------
def _reference_forward(params, x_ncl):
    x = x_ncl                                     # (B, C, L)
    for (w, b, gamma, beta, mean, var) in params["conv"]:
        K = w.shape[2]
        pad = K // 2
        L = x.shape[2]
        xp = jnp.pad(x, ((0, 0), (0, 0), (pad, pad)))
        cols = jnp.stack([xp[:, :, t:t + L] for t in range(K)], -1)  # (B,Ci,L,K)
        y = jnp.einsum('bclk,ock->bol', cols, w) + b[None, :, None]
        y = ((y - mean[None, :, None]) / jnp.sqrt(var[None, :, None] + _EPS)
             * gamma[None, :, None] + beta[None, :, None])
        y = jnp.maximum(y, 0.0)
        x = jnp.maximum(y[:, :, :-1], y[:, :, 1:])
    x = x.reshape(x.shape[0], -1)
    for (w, b) in params["fc"]:
        x = x @ w.T + b
    return x


if __name__ == "__main__":
    key = jax.random.PRNGKey(0)
    pkey, xkey = jax.random.split(key)

    params = init_params(pkey)
    B = 2
    x = jax.random.normal(xkey, (B, 128, 9), jnp.float32)   # PyTorch NCL input

    prepared = prepare_params(params)                        # one-time folding
    fwd = jax.jit(convnet_1d_forward)
    out = fwd(prepared, x)
    jax.block_until_ready(out)

    ref = _reference_forward(params, x)                      # fp32 spec
    assert out.shape == (B, 6), out.shape
    # Tolerance accounts for bf16 conv weights / im2col activations (fp32 acc);
    # structural errors would be O(|ref|) and still fail this check.
    max_err = float(jnp.max(jnp.abs(out - ref)))
    assert jnp.allclose(out, ref, rtol=2e-2, atol=1e-2), \
        f"mismatch vs reference (max abs err {max_err})"
    print("KERNEL_OK")
</pallas_src>

<mosaic_0001>
module attributes {stable_mosaic.version = 11 : i64} {
  func.func @fused_forward_kernel(%arg0: memref<2x9x128xf32, #tpu.memory_space<vmem>>, %arg1: memref<384x256xbf16, #tpu.memory_space<vmem>>, %arg2: memref<1x256xf32, #tpu.memory_space<vmem>>, %arg3: memref<768x128xbf16, #tpu.memory_space<vmem>>, %arg4: memref<1x128xf32, #tpu.memory_space<vmem>>, %arg5: memref<384x64xbf16, #tpu.memory_space<vmem>>, %arg6: memref<1x64xf32, #tpu.memory_space<vmem>>, %arg7: memref<192x32xbf16, #tpu.memory_space<vmem>>, %arg8: memref<1x32xf32, #tpu.memory_space<vmem>>, %arg9: memref<160x18xf32, #tpu.memory_space<vmem>>, %arg10: memref<1x18xf32, #tpu.memory_space<vmem>>, %arg11: memref<18x12xf32, #tpu.memory_space<vmem>>, %arg12: memref<1x12xf32, #tpu.memory_space<vmem>>, %arg13: memref<12x6xf32, #tpu.memory_space<vmem>>, %arg14: memref<1x6xf32, #tpu.memory_space<vmem>>, %arg15: memref<2x6xf32, #tpu.memory_space<vmem>>, %arg16: memref<24x768xf32, #tpu.memory_space<vmem>>, %arg17: memref<2x160xf32, #tpu.memory_space<vmem>>) attributes {dimension_semantics = [], scalar_prefetch = 0 : i64, scratch_operands = 2 : i64, tpu.core_type = #tpu.core_type<tc>} {
    %c0 = arith.constant 0 : index
    %c0_0 = arith.constant 0 : index
    %c0_1 = arith.constant 0 : index
    %0 = vector.load %arg0[%c0, %c0_0, %c0_1] : memref<2x9x128xf32, #tpu.memory_space<vmem>>, vector<1x9x128xf32>
    %1 = vector.shape_cast %0 : vector<1x9x128xf32> to vector<9x128xf32>
    %c1 = arith.constant 1 : index
    %c0_2 = arith.constant 0 : index
    %c0_3 = arith.constant 0 : index
    %2 = vector.load %arg0[%c1, %c0_2, %c0_3] : memref<2x9x128xf32, #tpu.memory_space<vmem>>, vector<1x9x128xf32>
    %3 = vector.shape_cast %2 : vector<1x9x128xf32> to vector<9x128xf32>
    %cst = arith.constant 0.000000e+00 : f32
    %4 = vector.broadcast %cst : f32 to vector<1x128xf32>
    %c0_4 = arith.constant 0 : index
    %c0_5 = arith.constant 0 : index
    %5 = vector.load %arg16[%c0_4, %c0_5] : memref<24x768xf32, #tpu.memory_space<vmem>>, vector<1x128xf32>
    tpu.vector_store %arg16[%c0_4, %c0_5], %4 {strides = array<i32>} : memref<24x768xf32, #tpu.memory_space<vmem>>, vector<1x128xf32>,
    %6 = vector.extract_strided_slice %1 {offsets = [0, 0], sizes = [8, 128], strides = [1, 1]} : vector<9x128xf32> to vector<8x128xf32>
    %c1_6 = arith.constant 1 : index
    %c0_7 = arith.constant 0 : index
    %7 = vector.load %arg16[%c1_6, %c0_7] : memref<24x768xf32, #tpu.memory_space<vmem>>, vector<8x128xf32>
    tpu.vector_store %arg16[%c1_6, %c0_7], %6 {strides = array<i32>} : memref<24x768xf32, #tpu.memory_space<vmem>>, vector<8x128xf32>,
    %c0_8 = arith.constant 0 : index
    %c128 = arith.constant 128 : index
    %8 = vector.load %arg16[%c0_8, %c128] : memref<24x768xf32, #tpu.memory_space<vmem>>, vector<9x128xf32>
    tpu.vector_store %arg16[%c0_8, %c128], %1 {strides = array<i32>} : memref<24x768xf32, #tpu.memory_space<vmem>>, vector<9x128xf32>,
    %9 = vector.extract_strided_slice %1 {offsets = [1, 0], sizes = [8, 128], strides = [1, 1]} : vector<9x128xf32> to vector<8x128xf32>
    %c0_9 = arith.constant 0 : index
    %c256 = arith.constant 256 : index
    %10 = vector.load %arg16[%c0_9, %c256] : memref<24x768xf32, #tpu.memory_space<vmem>>, vector<8x128xf32>
    tpu.vector_store %arg16[%c0_9, %c256], %9 {strides = array<i32>} : memref<24x768xf32, #tpu.memory_space<vmem>>, vector<8x128xf32>,
    %c8 = arith.constant 8 : index
    %c256_10 = arith.constant 256 : index
    %11 = vector.load %arg16[%c8, %c256_10] : memref<24x768xf32, #tpu.memory_space<vmem>>, vector<1x128xf32>
    tpu.vector_store %arg16[%c8, %c256_10], %4 {strides = array<i32>} : memref<24x768xf32, #tpu.memory_space<vmem>>, vector<1x128xf32>,
    %c9 = arith.constant 9 : index
    %c0_11 = arith.constant 0 : index
    %12 = vector.load %arg16[%c9, %c0_11] : memref<24x768xf32, #tpu.memory_space<vmem>>, vector<1x128xf32>
    tpu.vector_store %arg16[%c9, %c0_11], %4 {strides = array<i32>} : memref<24x768xf32, #tpu.memory_space<vmem>>, vector<1x128xf32>,
    %13 = vector.extract_strided_slice %3 {offsets = [0, 0], sizes = [8, 128], strides = [1, 1]} : vector<9x128xf32> to vector<8x128xf32>
    %c10 = arith.constant 10 : index
    %c0_12 = arith.constant 0 : index
    %14 = vector.load %arg16[%c10, %c0_12] : memref<24x768xf32, #tpu.memory_space<vmem>>, vector<8x128xf32>
    tpu.vector_store %arg16[%c10, %c0_12], %13 {strides = array<i32>} : memref<24x768xf32, #tpu.memory_space<vmem>>, vector<8x128xf32>,
    %c9_13 = arith.constant 9 : index
    %c128_14 = arith.constant 128 : index
    %15 = vector.load %arg16[%c9_13, %c128_14] : memref<24x768xf32, #tpu.memory_space<vmem>>, vector<9x128xf32>
    tpu.vector_store %arg16[%c9_13, %c128_14], %3 {strides = array<i32>} : memref<24x768xf32, #tpu.memory_space<vmem>>, vector<9x128xf32>,
    %16 = vector.extract_strided_slice %3 {offsets = [1, 0], sizes = [8, 128], strides = [1, 1]} : vector<9x128xf32> to vector<8x128xf32>
    %c9_15 = arith.constant 9 : index
    %c256_16 = arith.constant 256 : index
    %17 = vector.load %arg16[%c9_15, %c256_16] : memref<24x768xf32, #tpu.memory_space<vmem>>, vector<8x128xf32>
    tpu.vector_store %arg16[%c9_15, %c256_16], %16 {strides = array<i32>} : memref<24x768xf32, #tpu.memory_space<vmem>>, vector<8x128xf32>,
    %c17 = arith.constant 17 : index
    %c256_17 = arith.constant 256 : index
    %18 = vector.load %arg16[%c17, %c256_17] : memref<24x768xf32, #tpu.memory_space<vmem>>, vector<1x128xf32>
    tpu.vector_store %arg16[%c17, %c256_17], %4 {strides = array<i32>} : memref<24x768xf32, #tpu.memory_space<vmem>>, vector<1x128xf32>,
    %c0_18 = arith.constant 0 : index
    %c0_19 = arith.constant 0 : index
    %19 = vector.load %arg16[%c0_18, %c0_19] : memref<24x768xf32, #tpu.memory_space<vmem>>, vector<18x384xf32>
    %20 = arith.truncf %19 : vector<18x384xf32> to vector<18x384xbf16>
    %c0_20 = arith.constant 0 : index
    %c0_21 = arith.constant 0 : index
    %21 = vector.load %arg1[%c0_20, %c0_21] : memref<384x256xbf16, #tpu.memory_space<vmem>>, vector<384x256xbf16>
    %cst_22 = arith.constant dense<0.000000e+00> : vector<18x256xf32>
    %22 = tpu.matmul %20, %21, %cst_22 {dimension_numbers = #tpu.dot_dimension_numbers<[1], [0], [0], [1], [0, 0, 1, 1], [], []>} : vector<18x384xbf16>, vector<384x256xbf16>, vector<18x256xf32> -> vector<18x256xf32>
    %c0_23 = arith.constant 0 : index
    %c0_24 = arith.constant 0 : index
    %23 = vector.load %arg2[%c0_23, %c0_24] : memref<1x256xf32, #tpu.memory_space<vmem>>, vector<1x256xf32>
    %24 = vector.broadcast %23 : vector<1x256xf32> to vector<18x256xf32>
    %25 = arith.addf %22, %24 : vector<18x256xf32>
    %cst_25 = arith.constant 0.000000e+00 : f32
    %26 = vector.broadcast %cst_25 : f32 to vector<18x256xf32>
    %27 = arith.maximumf %25, %26 : vector<18x256xf32>
    %28 = vector.extract_strided_slice %27 {offsets = [0, 0], sizes = [8, 256], strides = [1, 1]} : vector<18x256xf32> to vector<8x256xf32>
    %29 = vector.extract_strided_slice %27 {offsets = [1, 0], sizes = [8, 256], strides = [1, 1]} : vector<18x256xf32> to vector<8x256xf32>
    %30 = arith.maximumf %28, %29 : vector<8x256xf32>
    %31 = vector.extract_strided_slice %27 {offsets = [9, 0], sizes = [8, 256], strides = [1, 1]} : vector<18x256xf32> to vector<8x256xf32>
    %32 = vector.extract_strided_slice %27 {offsets = [10, 0], sizes = [8, 256], strides = [1, 1]} : vector<18x256xf32> to vector<8x256xf32>
    %33 = arith.maximumf %31, %32 : vector<8x256xf32>
    %cst_26 = arith.constant 0.000000e+00 : f32
    %34 = vector.broadcast %cst_26 : f32 to vector<1x256xf32>
    %c0_27 = arith.constant 0 : index
    %c0_28 = arith.constant 0 : index
    %35 = vector.load %arg16[%c0_27, %c0_28] : memref<24x768xf32, #tpu.memory_space<vmem>>, vector<1x256xf32>
    tpu.vector_store %arg16[%c0_27, %c0_28], %34 {strides = array<i32>} : memref<24x768xf32, #tpu.memory_space<vmem>>, vector<1x256xf32>,
    %36 = vector.extract_strided_slice %30 {offsets = [0, 0], sizes = [7, 256], strides = [1, 1]} : vector<8x256xf32> to vector<7x256xf32>
    %c1_29 = arith.constant 1 : index
    %c0_30 = arith.constant 0 : index
    %37 = vector.load %arg16[%c1_29, %c0_30] : memref<24x768xf32, #tpu.memory_space<vmem>>, vector<7x256xf32>
    tpu.vector_store %arg16[%c1_29, %c0_30], %36 {strides = array<i32>} : memref<24x768xf32, #tpu.memory_space<vmem>>, vector<7x256xf32>,
    %c0_31 = arith.constant 0 : index
    %c256_32 = arith.constant 256 : index
    %38 = vector.load %arg16[%c0_31, %c256_32] : memref<24x768xf32, #tpu.memory_space<vmem>>, vector<8x256xf32>
    tpu.vector_store %arg16[%c0_31, %c256_32], %30 {strides = array<i32>} : memref<24x768xf32, #tpu.memory_space<vmem>>, vector<8x256xf32>,
    %39 = vector.extract_strided_slice %30 {offsets = [1, 0], sizes = [7, 256], strides = [1, 1]} : vector<8x256xf32> to vector<7x256xf32>
    %c0_33 = arith.constant 0 : index
    %c512 = arith.constant 512 : index
    %40 = vector.load %arg16[%c0_33, %c512] : memref<24x768xf32, #tpu.memory_space<vmem>>, vector<7x256xf32>
    tpu.vector_store %arg16[%c0_33, %c512], %39 {strides = array<i32>} : memref<24x768xf32, #tpu.memory_space<vmem>>, vector<7x256xf32>,
    %c7 = arith.constant 7 : index
    %c512_34 = arith.constant 512 : index
    %41 = vector.load %arg16[%c7, %c512_34] : memref<24x768xf32, #tpu.memory_space<vmem>>, vector<1x256xf32>
    tpu.vector_store %arg16[%c7, %c512_34], %34 {strides = array<i32>} : memref<24x768xf32, #tpu.memory_space<vmem>>, vector<1x256xf32>,
    %c8_35 = arith.constant 8 : index
    %c0_36 = arith.constant 0 : index
    %42 = vector.load %arg16[%c8_35, %c0_36] : memref<24x768xf32, #tpu.memory_space<vmem>>, vector<1x256xf32>
    tpu.vector_store %arg16[%c8_35, %c0_36], %34 {strides = array<i32>} : memref<24x768xf32, #tpu.memory_space<vmem>>, vector<1x256xf32>,
    %43 = vector.extract_strided_slice %33 {offsets = [0, 0], sizes = [7, 256], strides = [1, 1]} : vector<8x256xf32> to vector<7x256xf32>
    %c9_37 = arith.constant 9 : index
    %c0_38 = arith.constant 0 : index
    %44 = vector.load %arg16[%c9_37, %c0_38] : memref<24x768xf32, #tpu.memory_space<vmem>>, vector<7x256xf32>
    tpu.vector_store %arg16[%c9_37, %c0_38], %43 {strides = array<i32>} : memref<24x768xf32, #tpu.memory_space<vmem>>, vector<7x256xf32>,
    %c8_39 = arith.constant 8 : index
    %c256_40 = arith.constant 256 : index
    %45 = vector.load %arg16[%c8_39, %c256_40] : memref<24x768xf32, #tpu.memory_space<vmem>>, vector<8x256xf32>
    tpu.vector_store %arg16[%c8_39, %c256_40], %33 {strides = array<i32>} : memref<24x768xf32, #tpu.memory_space<vmem>>, vector<8x256xf32>,
    %46 = vector.extract_strided_slice %33 {offsets = [1, 0], sizes = [7, 256], strides = [1, 1]} : vector<8x256xf32> to vector<7x256xf32>
    %c8_41 = arith.constant 8 : index
    %c512_42 = arith.constant 512 : index
    %47 = vector.load %arg16[%c8_41, %c512_42] : memref<24x768xf32, #tpu.memory_space<vmem>>, vector<7x256xf32>
    tpu.vector_store %arg16[%c8_41, %c512_42], %46 {strides = array<i32>} : memref<24x768xf32, #tpu.memory_space<vmem>>, vector<7x256xf32>,
    %c15 = arith.constant 15 : index
    %c512_43 = arith.constant 512 : index
    %48 = vector.load %arg16[%c15, %c512_43] : memref<24x768xf32, #tpu.memory_space<vmem>>, vector<1x256xf32>
    tpu.vector_store %arg16[%c15, %c512_43], %34 {strides = array<i32>} : memref<24x768xf32, #tpu.memory_space<vmem>>, vector<1x256xf32>,
    %c0_44 = arith.constant 0 : index
    %c0_45 = arith.constant 0 : index
    %49 = vector.load %arg16[%c0_44, %c0_45] : memref<24x768xf32, #tpu.memory_space<vmem>>, vector<16x768xf32>
    %50 = arith.truncf %49 : vector<16x768xf32> to vector<16x768xbf16>
    %c0_46 = arith.constant 0 : index
    %c0_47 = arith.constant 0 : index
    %51 = vector.load %arg3[%c0_46, %c0_47] : memref<768x128xbf16, #tpu.memory_space<vmem>>, vector<768x128xbf16>
    %cst_48 = arith.constant dense<0.000000e+00> : vector<16x128xf32>
    %52 = tpu.matmul %50, %51, %cst_48 {dimension_numbers = #tpu.dot_dimension_numbers<[1], [0], [0], [1], [0, 0, 1, 1], [], []>} : vector<16x768xbf16>, vector<768x128xbf16>, vector<16x128xf32> -> vector<16x128xf32>
    %c0_49 = arith.constant 0 : index
    %c0_50 = arith.constant 0 : index
    %53 = vector.load %arg4[%c0_49, %c0_50] : memref<1x128xf32, #tpu.memory_space<vmem>>, vector<1x128xf32>
    %54 = vector.broadcast %53 : vector<1x128xf32> to vector<16x128xf32>
    %55 = arith.addf %52, %54 : vector<16x128xf32>
    %cst_51 = arith.constant 0.000000e+00 : f32
    %56 = vector.broadcast %cst_51 : f32 to vector<16x128xf32>
    %57 = arith.maximumf %55, %56 : vector<16x128xf32>
    %58 = vector.extract_strided_slice %57 {offsets = [0, 0], sizes = [7, 128], strides = [1, 1]} : vector<16x128xf32> to vector<7x128xf32>
    %59 = vector.extract_strided_slice %57 {offsets = [1, 0], sizes = [7, 128], strides = [1, 1]} : vector<16x128xf32> to vector<7x128xf32>
    %60 = arith.maximumf %58, %59 : vector<7x128xf32>
    %61 = vector.extract_strided_slice %57 {offsets = [8, 0], sizes = [7, 128], strides = [1, 1]} : vector<16x128xf32> to vector<7x128xf32>
    %62 = vector.extract_strided_slice %57 {offsets = [9, 0], sizes = [7, 128], strides = [1, 1]} : vector<16x128xf32> to vector<7x128xf32>
    %63 = arith.maximumf %61, %62 : vector<7x128xf32>
    %cst_52 = arith.constant 0.000000e+00 : f32
    %64 = vector.broadcast %cst_52 : f32 to vector<1x128xf32>
    %c0_53 = arith.constant 0 : index
    %c0_54 = arith.constant 0 : index
    %65 = vector.load %arg16[%c0_53, %c0_54] : memref<24x768xf32, #tpu.memory_space<vmem>>, vector<1x128xf32>
    tpu.vector_store %arg16[%c0_53, %c0_54], %64 {strides = array<i32>} : memref<24x768xf32, #tpu.memory_space<vmem>>, vector<1x128xf32>,
    %66 = vector.extract_strided_slice %60 {offsets = [0, 0], sizes = [6, 128], strides = [1, 1]} : vector<7x128xf32> to vector<6x128xf32>
    %c1_55 = arith.constant 1 : index
    %c0_56 = arith.constant 0 : index
    %67 = vector.load %arg16[%c1_55, %c0_56] : memref<24x768xf32, #tpu.memory_space<vmem>>, vector<6x128xf32>
    tpu.vector_store %arg16[%c1_55, %c0_56], %66 {strides = array<i32>} : memref<24x768xf32, #tpu.memory_space<vmem>>, vector<6x128xf32>,
    %c0_57 = arith.constant 0 : index
    %c128_58 = arith.constant 128 : index
    %68 = vector.load %arg16[%c0_57, %c128_58] : memref<24x768xf32, #tpu.memory_space<vmem>>, vector<7x128xf32>
    tpu.vector_store %arg16[%c0_57, %c128_58], %60 {strides = array<i32>} : memref<24x768xf32, #tpu.memory_space<vmem>>, vector<7x128xf32>,
    %69 = vector.extract_strided_slice %60 {offsets = [1, 0], sizes = [6, 128], strides = [1, 1]} : vector<7x128xf32> to vector<6x128xf32>
    %c0_59 = arith.constant 0 : index
    %c256_60 = arith.constant 256 : index
    %70 = vector.load %arg16[%c0_59, %c256_60] : memref<24x768xf32, #tpu.memory_space<vmem>>, vector<6x128xf32>
    tpu.vector_store %arg16[%c0_59, %c256_60], %69 {strides = array<i32>} : memref<24x768xf32, #tpu.memory_space<vmem>>, vector<6x128xf32>,
    %c6 = arith.constant 6 : index
    %c256_61 = arith.constant 256 : index
    %71 = vector.load %arg16[%c6, %c256_61] : memref<24x768xf32, #tpu.memory_space<vmem>>, vector<1x128xf32>
    tpu.vector_store %arg16[%c6, %c256_61], %64 {strides = array<i32>} : memref<24x768xf32, #tpu.memory_space<vmem>>, vector<1x128xf32>,
    %c7_62 = arith.constant 7 : index
    %c0_63 = arith.constant 0 : index
    %72 = vector.load %arg16[%c7_62, %c0_63] : memref<24x768xf32, #tpu.memory_space<vmem>>, vector<1x128xf32>
    tpu.vector_store %arg16[%c7_62, %c0_63], %64 {strides = array<i32>} : memref<24x768xf32, #tpu.memory_space<vmem>>, vector<1x128xf32>,
    %73 = vector.extract_strided_slice %63 {offsets = [0, 0], sizes = [6, 128], strides = [1, 1]} : vector<7x128xf32> to vector<6x128xf32>
    %c8_64 = arith.constant 8 : index
    %c0_65 = arith.constant 0 : index
    %74 = vector.load %arg16[%c8_64, %c0_65] : memref<24x768xf32, #tpu.memory_space<vmem>>, vector<6x128xf32>
    tpu.vector_store %arg16[%c8_64, %c0_65], %73 {strides = array<i32>} : memref<24x768xf32, #tpu.memory_space<vmem>>, vector<6x128xf32>,
    %c7_66 = arith.constant 7 : index
    %c128_67 = arith.constant 128 : index
    %75 = vector.load %arg16[%c7_66, %c128_67] : memref<24x768xf32, #tpu.memory_space<vmem>>, vector<7x128xf32>
    tpu.vector_store %arg16[%c7_66, %c128_67], %63 {strides = array<i32>} : memref<24x768xf32, #tpu.memory_space<vmem>>, vector<7x128xf32>,
    %76 = vector.extract_strided_slice %63 {offsets = [1, 0], sizes = [6, 128], strides = [1, 1]} : vector<7x128xf32> to vector<6x128xf32>
    %c7_68 = arith.constant 7 : index
    %c256_69 = arith.constant 256 : index
    %77 = vector.load %arg16[%c7_68, %c256_69] : memref<24x768xf32, #tpu.memory_space<vmem>>, vector<6x128xf32>
    tpu.vector_store %arg16[%c7_68, %c256_69], %76 {strides = array<i32>} : memref<24x768xf32, #tpu.memory_space<vmem>>, vector<6x128xf32>,
    %c13 = arith.constant 13 : index
    %c256_70 = arith.constant 256 : index
    %78 = vector.load %arg16[%c13, %c256_70] : memref<24x768xf32, #tpu.memory_space<vmem>>, vector<1x128xf32>
    tpu.vector_store %arg16[%c13, %c256_70], %64 {strides = array<i32>} : memref<24x768xf32, #tpu.memory_space<vmem>>, vector<1x128xf32>,
    %c0_71 = arith.constant 0 : index
    %c0_72 = arith.constant 0 : index
    %79 = vector.load %arg16[%c0_71, %c0_72] : memref<24x768xf32, #tpu.memory_space<vmem>>, vector<14x384xf32>
    %80 = arith.truncf %79 : vector<14x384xf32> to vector<14x384xbf16>
    %c0_73 = arith.constant 0 : index
    %c0_74 = arith.constant 0 : index
    %81 = vector.load %arg5[%c0_73, %c0_74] : memref<384x64xbf16, #tpu.memory_space<vmem>>, vector<384x64xbf16>
    %cst_75 = arith.constant dense<0.000000e+00> : vector<14x64xf32>
    %82 = tpu.matmul %80, %81, %cst_75 {dimension_numbers = #tpu.dot_dimension_numbers<[1], [0], [0], [1], [0, 0, 1, 1], [], []>} : vector<14x384xbf16>, vector<384x64xbf16>, vector<14x64xf32> -> vector<14x64xf32>
    %c0_76 = arith.constant 0 : index
    %c0_77 = arith.constant 0 : index
    %83 = vector.load %arg6[%c0_76, %c0_77] : memref<1x64xf32, #tpu.memory_space<vmem>>, vector<1x64xf32>
    %84 = vector.broadcast %83 : vector<1x64xf32> to vector<14x64xf32>
    %85 = arith.addf %82, %84 : vector<14x64xf32>
    %cst_78 = arith.constant 0.000000e+00 : f32
    %86 = vector.broadcast %cst_78 : f32 to vector<14x64xf32>
    %87 = arith.maximumf %85, %86 : vector<14x64xf32>
    %88 = vector.extract_strided_slice %87 {offsets = [0, 0], sizes = [6, 64], strides = [1, 1]} : vector<14x64xf32> to vector<6x64xf32>
    %89 = vector.extract_strided_slice %87 {offsets = [1, 0], sizes = [6, 64], strides = [1, 1]} : vector<14x64xf32> to vector<6x64xf32>
    %90 = arith.maximumf %88, %89 : vector<6x64xf32>
    %91 = vector.extract_strided_slice %87 {offsets = [7, 0], sizes = [6, 64], strides = [1, 1]} : vector<14x64xf32> to vector<6x64xf32>
    %92 = vector.extract_strided_slice %87 {offsets = [8, 0], sizes = [6, 64], strides = [1, 1]} : vector<14x64xf32> to vector<6x64xf32>
    %93 = arith.maximumf %91, %92 : vector<6x64xf32>
    %cst_79 = arith.constant 0.000000e+00 : f32
    %94 = vector.broadcast %cst_79 : f32 to vector<1x64xf32>
    %c0_80 = arith.constant 0 : index
    %c0_81 = arith.constant 0 : index
    %95 = vector.load %arg16[%c0_80, %c0_81] : memref<24x768xf32, #tpu.memory_space<vmem>>, vector<1x64xf32>
    tpu.vector_store %arg16[%c0_80, %c0_81], %94 {strides = array<i32>} : memref<24x768xf32, #tpu.memory_space<vmem>>, vector<1x64xf32>,
    %96 = vector.extract_strided_slice %90 {offsets = [0, 0], sizes = [5, 64], strides = [1, 1]} : vector<6x64xf32> to vector<5x64xf32>
    %c1_82 = arith.constant 1 : index
    %c0_83 = arith.constant 0 : index
    %97 = vector.load %arg16[%c1_82, %c0_83] : memref<24x768xf32, #tpu.memory_space<vmem>>, vector<5x64xf32>
    tpu.vector_store %arg16[%c1_82, %c0_83], %96 {strides = array<i32>} : memref<24x768xf32, #tpu.memory_space<vmem>>, vector<5x64xf32>,
    %c0_84 = arith.constant 0 : index
    %c64 = arith.constant 64 : index
    %98 = vector.load %arg16[%c0_84, %c64] : memref<24x768xf32, #tpu.memory_space<vmem>>, vector<6x64xf32>
    tpu.vector_store %arg16[%c0_84, %c64], %90 {strides = array<i32>} : memref<24x768xf32, #tpu.memory_space<vmem>>, vector<6x64xf32>,
    %99 = vector.extract_strided_slice %90 {offsets = [1, 0], sizes = [5, 64], strides = [1, 1]} : vector<6x64xf32> to vector<5x64xf32>
    %c0_85 = arith.constant 0 : index
    %c128_86 = arith.constant 128 : index
    %100 = vector.load %arg16[%c0_85, %c128_86] : memref<24x768xf32, #tpu.memory_space<vmem>>, vector<5x64xf32>
    tpu.vector_store %arg16[%c0_85, %c128_86], %99 {strides = array<i32>} : memref<24x768xf32, #tpu.memory_space<vmem>>, vector<5x64xf32>,
    %c5 = arith.constant 5 : index
    %c128_87 = arith.constant 128 : index
    %101 = vector.load %arg16[%c5, %c128_87] : memref<24x768xf32, #tpu.memory_space<vmem>>, vector<1x64xf32>
    tpu.vector_store %arg16[%c5, %c128_87], %94 {strides = array<i32>} : memref<24x768xf32, #tpu.memory_space<vmem>>, vector<1x64xf32>,
    %c6_88 = arith.constant 6 : index
    %c0_89 = arith.constant 0 : index
    %102 = vector.load %arg16[%c6_88, %c0_89] : memref<24x768xf32, #tpu.memory_space<vmem>>, vector<1x64xf32>
    tpu.vector_store %arg16[%c6_88, %c0_89], %94 {strides = array<i32>} : memref<24x768xf32, #tpu.memory_space<vmem>>, vector<1x64xf32>,
    %103 = vector.extract_strided_slice %93 {offsets = [0, 0], sizes = [5, 64], strides = [1, 1]} : vector<6x64xf32> to vector<5x64xf32>
    %c7_90 = arith.constant 7 : index
    %c0_91 = arith.constant 0 : index
    %104 = vector.load %arg16[%c7_90, %c0_91] : memref<24x768xf32, #tpu.memory_space<vmem>>, vector<5x64xf32>
    tpu.vector_store %arg16[%c7_90, %c0_91], %103 {strides = array<i32>} : memref<24x768xf32, #tpu.memory_space<vmem>>, vector<5x64xf32>,
    %c6_92 = arith.constant 6 : index
    %c64_93 = arith.constant 64 : index
    %105 = vector.load %arg16[%c6_92, %c64_93] : memref<24x768xf32, #tpu.memory_space<vmem>>, vector<6x64xf32>
    tpu.vector_store %arg16[%c6_92, %c64_93], %93 {strides = array<i32>} : memref<24x768xf32, #tpu.memory_space<vmem>>, vector<6x64xf32>,
    %106 = vector.extract_strided_slice %93 {offsets = [1, 0], sizes = [5, 64], strides = [1, 1]} : vector<6x64xf32> to vector<5x64xf32>
    %c6_94 = arith.constant 6 : index
    %c128_95 = arith.constant 128 : index
    %107 = vector.load %arg16[%c6_94, %c128_95] : memref<24x768xf32, #tpu.memory_space<vmem>>, vector<5x64xf32>
    tpu.vector_store %arg16[%c6_94, %c128_95], %106 {strides = array<i32>} : memref<24x768xf32, #tpu.memory_space<vmem>>, vector<5x64xf32>,
    %c11 = arith.constant 11 : index
    %c128_96 = arith.constant 128 : index
    %108 = vector.load %arg16[%c11, %c128_96] : memref<24x768xf32, #tpu.memory_space<vmem>>, vector<1x64xf32>
    tpu.vector_store %arg16[%c11, %c128_96], %94 {strides = array<i32>} : memref<24x768xf32, #tpu.memory_space<vmem>>, vector<1x64xf32>,
    %c0_97 = arith.constant 0 : index
    %c0_98 = arith.constant 0 : index
    %109 = vector.load %arg16[%c0_97, %c0_98] : memref<24x768xf32, #tpu.memory_space<vmem>>, vector<12x192xf32>
    %110 = arith.truncf %109 : vector<12x192xf32> to vector<12x192xbf16>
    %c0_99 = arith.constant 0 : index
    %c0_100 = arith.constant 0 : index
    %111 = vector.load %arg7[%c0_99, %c0_100] : memref<192x32xbf16, #tpu.memory_space<vmem>>, vector<192x32xbf16>
    %cst_101 = arith.constant dense<0.000000e+00> : vector<12x32xf32>
    %112 = tpu.matmul %110, %111, %cst_101 {dimension_numbers = #tpu.dot_dimension_numbers<[1], [0], [0], [1], [0, 0, 1, 1], [], []>} : vector<12x192xbf16>, vector<192x32xbf16>, vector<12x32xf32> -> vector<12x32xf32>
    %c0_102 = arith.constant 0 : index
    %c0_103 = arith.constant 0 : index
    %113 = vector.load %arg8[%c0_102, %c0_103] : memref<1x32xf32, #tpu.memory_space<vmem>>, vector<1x32xf32>
    %114 = vector.broadcast %113 : vector<1x32xf32> to vector<12x32xf32>
    %115 = arith.addf %112, %114 : vector<12x32xf32>
    %cst_104 = arith.constant 0.000000e+00 : f32
    %116 = vector.broadcast %cst_104 : f32 to vector<12x32xf32>
    %117 = arith.maximumf %115, %116 : vector<12x32xf32>
    %118 = vector.extract_strided_slice %117 {offsets = [0, 0], sizes = [5, 32], strides = [1, 1]} : vector<12x32xf32> to vector<5x32xf32>
    %119 = vector.extract_strided_slice %117 {offsets = [1, 0], sizes = [5, 32], strides = [1, 1]} : vector<12x32xf32> to vector<5x32xf32>
    %120 = arith.maximumf %118, %119 : vector<5x32xf32>
    %121 = vector.extract_strided_slice %117 {offsets = [6, 0], sizes = [5, 32], strides = [1, 1]} : vector<12x32xf32> to vector<5x32xf32>
    %122 = vector.extract_strided_slice %117 {offsets = [7, 0], sizes = [5, 32], strides = [1, 1]} : vector<12x32xf32> to vector<5x32xf32>
    %123 = arith.maximumf %121, %122 : vector<5x32xf32>
    %124 = vector.extract_strided_slice %120 {offsets = [0, 0], sizes = [1, 32], strides = [1, 1]} : vector<5x32xf32> to vector<1x32xf32>
    %c0_105 = arith.constant 0 : index
    %c0_106 = arith.constant 0 : index
    %125 = vector.load %arg17[%c0_105, %c0_106] : memref<2x160xf32, #tpu.memory_space<vmem>>, vector<1x32xf32>
    tpu.vector_store %arg17[%c0_105, %c0_106], %124 {strides = array<i32>} : memref<2x160xf32, #tpu.memory_space<vmem>>, vector<1x32xf32>,
    %126 = vector.extract_strided_slice %120 {offsets = [1, 0], sizes = [1, 32], strides = [1, 1]} : vector<5x32xf32> to vector<1x32xf32>
    %c0_107 = arith.constant 0 : index
    %c32 = arith.constant 32 : index
    %127 = vector.load %arg17[%c0_107, %c32] : memref<2x160xf32, #tpu.memory_space<vmem>>, vector<1x32xf32>
    tpu.vector_store %arg17[%c0_107, %c32], %126 {strides = array<i32>} : memref<2x160xf32, #tpu.memory_space<vmem>>, vector<1x32xf32>,
    %128 = vector.extract_strided_slice %120 {offsets = [2, 0], sizes = [1, 32], strides = [1, 1]} : vector<5x32xf32> to vector<1x32xf32>
    %c0_108 = arith.constant 0 : index
    %c64_109 = arith.constant 64 : index
    %129 = vector.load %arg17[%c0_108, %c64_109] : memref<2x160xf32, #tpu.memory_space<vmem>>, vector<1x32xf32>
    tpu.vector_store %arg17[%c0_108, %c64_109], %128 {strides = array<i32>} : memref<2x160xf32, #tpu.memory_space<vmem>>, vector<1x32xf32>,
    %130 = vector.extract_strided_slice %120 {offsets = [3, 0], sizes = [1, 32], strides = [1, 1]} : vector<5x32xf32> to vector<1x32xf32>
    %c0_110 = arith.constant 0 : index
    %c96 = arith.constant 96 : index
    %131 = vector.load %arg17[%c0_110, %c96] : memref<2x160xf32, #tpu.memory_space<vmem>>, vector<1x32xf32>
    tpu.vector_store %arg17[%c0_110, %c96], %130 {strides = array<i32>} : memref<2x160xf32, #tpu.memory_space<vmem>>, vector<1x32xf32>,
    %132 = vector.extract_strided_slice %120 {offsets = [4, 0], sizes = [1, 32], strides = [1, 1]} : vector<5x32xf32> to vector<1x32xf32>
    %c0_111 = arith.constant 0 : index
    %c128_112 = arith.constant 128 : index
    %133 = vector.load %arg17[%c0_111, %c128_112] : memref<2x160xf32, #tpu.memory_space<vmem>>, vector<1x32xf32>
    tpu.vector_store %arg17[%c0_111, %c128_112], %132 {strides = array<i32>} : memref<2x160xf32, #tpu.memory_space<vmem>>, vector<1x32xf32>,
    %134 = vector.extract_strided_slice %123 {offsets = [0, 0], sizes = [1, 32], strides = [1, 1]} : vector<5x32xf32> to vector<1x32xf32>
    %c1_113 = arith.constant 1 : index
    %c0_114 = arith.constant 0 : index
    %135 = vector.load %arg17[%c1_113, %c0_114] : memref<2x160xf32, #tpu.memory_space<vmem>>, vector<1x32xf32>
    tpu.vector_store %arg17[%c1_113, %c0_114], %134 {strides = array<i32>} : memref<2x160xf32, #tpu.memory_space<vmem>>, vector<1x32xf32>,
    %136 = vector.extract_strided_slice %123 {offsets = [1, 0], sizes = [1, 32], strides = [1, 1]} : vector<5x32xf32> to vector<1x32xf32>
    %c1_115 = arith.constant 1 : index
    %c32_116 = arith.constant 32 : index
    %137 = vector.load %arg17[%c1_115, %c32_116] : memref<2x160xf32, #tpu.memory_space<vmem>>, vector<1x32xf32>
    tpu.vector_store %arg17[%c1_115, %c32_116], %136 {strides = array<i32>} : memref<2x160xf32, #tpu.memory_space<vmem>>, vector<1x32xf32>,
    %138 = vector.extract_strided_slice %123 {offsets = [2, 0], sizes = [1, 32], strides = [1, 1]} : vector<5x32xf32> to vector<1x32xf32>
    %c1_117 = arith.constant 1 : index
    %c64_118 = arith.constant 64 : index
    %139 = vector.load %arg17[%c1_117, %c64_118] : memref<2x160xf32, #tpu.memory_space<vmem>>, vector<1x32xf32>
    tpu.vector_store %arg17[%c1_117, %c64_118], %138 {strides = array<i32>} : memref<2x160xf32, #tpu.memory_space<vmem>>, vector<1x32xf32>,
    %140 = vector.extract_strided_slice %123 {offsets = [3, 0], sizes = [1, 32], strides = [1, 1]} : vector<5x32xf32> to vector<1x32xf32>
    %c1_119 = arith.constant 1 : index
    %c96_120 = arith.constant 96 : index
    %141 = vector.load %arg17[%c1_119, %c96_120] : memref<2x160xf32, #tpu.memory_space<vmem>>, vector<1x32xf32>
    tpu.vector_store %arg17[%c1_119, %c96_120], %140 {strides = array<i32>} : memref<2x160xf32, #tpu.memory_space<vmem>>, vector<1x32xf32>,
    %142 = vector.extract_strided_slice %123 {offsets = [4, 0], sizes = [1, 32], strides = [1, 1]} : vector<5x32xf32> to vector<1x32xf32>
    %c1_121 = arith.constant 1 : index
    %c128_122 = arith.constant 128 : index
    %143 = vector.load %arg17[%c1_121, %c128_122] : memref<2x160xf32, #tpu.memory_space<vmem>>, vector<1x32xf32>
    tpu.vector_store %arg17[%c1_121, %c128_122], %142 {strides = array<i32>} : memref<2x160xf32, #tpu.memory_space<vmem>>, vector<1x32xf32>,
    %c0_123 = arith.constant 0 : index
    %c0_124 = arith.constant 0 : index
    %144 = vector.load %arg17[%c0_123, %c0_124] : memref<2x160xf32, #tpu.memory_space<vmem>>, vector<2x160xf32>
    %c0_125 = arith.constant 0 : index
    %c0_126 = arith.constant 0 : index
    %145 = vector.load %arg9[%c0_125, %c0_126] : memref<160x18xf32, #tpu.memory_space<vmem>>, vector<160x18xf32>
    %cst_127 = arith.constant dense<0.000000e+00> : vector<2x18xf32>
    %146 = tpu.matmul %144, %145, %cst_127 {dimension_numbers = #tpu.dot_dimension_numbers<[1], [0], [0], [1], [0, 0, 1, 1], [], []>} : vector<2x160xf32>, vector<160x18xf32>, vector<2x18xf32> -> vector<2x18xf32>
    %c0_128 = arith.constant 0 : index
    %c0_129 = arith.constant 0 : index
    %147 = vector.load %arg10[%c0_128, %c0_129] : memref<1x18xf32, #tpu.memory_space<vmem>>, vector<1x18xf32>
    %148 = vector.broadcast %147 : vector<1x18xf32> to vector<2x18xf32>
    %149 = arith.addf %146, %148 : vector<2x18xf32>
    %c0_130 = arith.constant 0 : index
    %c0_131 = arith.constant 0 : index
    %150 = vector.load %arg11[%c0_130, %c0_131] : memref<18x12xf32, #tpu.memory_space<vmem>>, vector<18x12xf32>
    %cst_132 = arith.constant dense<0.000000e+00> : vector<2x12xf32>
    %151 = tpu.matmul %149, %150, %cst_132 {dimension_numbers = #tpu.dot_dimension_numbers<[1], [0], [0], [1], [0, 0, 1, 1], [], []>} : vector<2x18xf32>, vector<18x12xf32>, vector<2x12xf32> -> vector<2x12xf32>
    %c0_133 = arith.constant 0 : index
    %c0_134 = arith.constant 0 : index
    %152 = vector.load %arg12[%c0_133, %c0_134] : memref<1x12xf32, #tpu.memory_space<vmem>>, vector<1x12xf32>
    %153 = vector.broadcast %152 : vector<1x12xf32> to vector<2x12xf32>
    %154 = arith.addf %151, %153 : vector<2x12xf32>
    %c0_135 = arith.constant 0 : index
    %c0_136 = arith.constant 0 : index
    %155 = vector.load %arg13[%c0_135, %c0_136] : memref<12x6xf32, #tpu.memory_space<vmem>>, vector<12x6xf32>
    %cst_137 = arith.constant dense<0.000000e+00> : vector<2x6xf32>
    %156 = tpu.matmul %154, %155, %cst_137 {dimension_numbers = #tpu.dot_dimension_numbers<[1], [0], [0], [1], [0, 0, 1, 1], [], []>} : vector<2x12xf32>, vector<12x6xf32>, vector<2x6xf32> -> vector<2x6xf32>
    %c0_138 = arith.constant 0 : index
    %c0_139 = arith.constant 0 : index
    %157 = vector.load %arg14[%c0_138, %c0_139] : memref<1x6xf32, #tpu.memory_space<vmem>>, vector<1x6xf32>
    %158 = vector.broadcast %157 : vector<1x6xf32> to vector<2x6xf32>
    %159 = arith.addf %156, %158 : vector<2x6xf32>
    %c0_140 = arith.constant 0 : index
    %c0_141 = arith.constant 0 : index
    %160 = vector.load %arg15[%c0_140, %c0_141] : memref<2x6xf32, #tpu.memory_space<vmem>>, vector<2x6xf32>
    tpu.vector_store %arg15[%c0_140, %c0_141], %159 {strides = array<i32>} : memref<2x6xf32, #tpu.memory_space<vmem>>, vector<2x6xf32>,
    return
  }
}

</mosaic_0001>

<bundles_post_ra>
// kernel: convnet_1d_forward.1
= control target key start
LH: loop header
LB: loop body
LE: loop exit
PB: predicated region body
PF: predicated region fallthrough
CT: control target
= control target key end

     0   :  { %20 = vsyncpa [#allocation5], 0  ;;  %s3231_s0 = inlined_call_operand.vmem [shape: f32[2,9,128], index: 0, kind: input, shape index: {}]   ;;  %s3232_s1 = inlined_call_operand.vmem [shape: bf16[384,256], index: 1, kind: input, shape index: {}]   ;;  %s3233_s2 = inlined_call_operand.vmem [shape: f32[1,256], index: 2, kind: input, shape index: {}]   ;;  %s3234_s3 = inlined_call_operand.hbm [shape: bf16[768,128], index: 3, kind: input, shape index: {}]   ;;  %s3235_s4 = inlined_call_operand.vmem [shape: f32[1,128], index: 4, kind: input, shape index: {}]   ;;  %s3236_s5 = inlined_call_operand.vmem [shape: bf16[384,64], index: 5, kind: input, shape index: {}]   ;;  %s3237_s6 = inlined_call_operand.vmem [shape: f32[1,64], index: 6, kind: input, shape index: {}]   ;;  %s3238_s7 = inlined_call_operand.vmem [shape: bf16[192,32], index: 7, kind: input, shape index: {}]   ;;  %s3239_s8 = inlined_call_operand.vmem [shape: f32[1,32], index: 8, kind: input, shape index: {}]   ;;  %s3240_s9 = inlined_call_operand.vmem [shape: f32[160,18], index: 9, kind: input, shape index: {}]   ;;  %s3241_s10 = inlined_call_operand.vmem [shape: f32[1,18], index: 10, kind: input, shape index: {}]   ;;  %s3242_s11 = inlined_call_operand.vmem [shape: f32[18,12], index: 11, kind: input, shape index: {}]   ;;  %s3243_s12 = inlined_call_operand.vmem [shape: f32[1,12], index: 12, kind: input, shape index: {}]   ;;  %s3244_s13 = inlined_call_operand.vmem [shape: f32[12,6], index: 13, kind: input, shape index: {}]   ;;  %s3245_s14 = inlined_call_operand.vmem [shape: f32[1,6], index: 14, kind: input, shape index: {}]   ;;  %s3246_s15 = inlined_call_operand.hbm [shape: f32[2,6], index: 15, kind: output, shape index: {}]  }
   0x1   :  { %21 = vsyncpa [#allocation6], 0  ;;  %s32_s20 = sshll.u32 %s3234_s3, 4  ;;  %s2553_s21 = smov [#allocation4]   ;;  %s33_s20 = int_to_ptr.hbm [resolvable:$true] %s32_s20 }
   0x2   :  { %s34_s22 = sshll.u32 %s2553_s21, 4  ;;  %s2554_s23 = smov 64   ;;  %s35_s22 = int_to_ptr.vmem [resolvable:$true] %s34_s22 }
   0x3   :  { %s2555_s24 = smov 4  }
   0x4   :  { %40 = dma.hbm_to_vmem [thread:$0]  %s33_s20, 6144, %s35_s22, [#allocation5], %s2554_s23, %s2554_s23, %s2555_s24  }
   0x5   :  { %2549 = dma.done.wait [#allocation5], 6144  }
   0x6   :  { %2550 = vsyncadd [#allocation5], 4294961152  ;;  %v2556_v0 = vmov 0.0   ;;  %v1876_v1 = vld [vmem:[%s3232_s1 + $0x70] sm:$0xf]  ;;  %vm82_vm1 = vcmask 1046528  }
   0x7   :  { %73 = vst [vmem:[#allocation2] sm:$0x1] %v2556_v0  ;;  %v2371_v2 = vld [vmem:[%s3232_s1 + $0x74] sm:$0xf0]  ;;  %v1940_v3 = vld [vmem:[%s3232_s1 + $0xf0] sm:$0xf] }
   0x8   :  { %89 = vst [vmem:[#allocation2 + $0x31] sm:$0x1] %v2556_v0  ;;  %v1877_v4 = vor.u32 %v2371_v2, %v1876_v1  ;;  %v2387_v5 = vld [vmem:[%s3232_s1 + $0xf4] sm:$0xf0]  ;;  %v2004_v6 = vld [vmem:[%s3232_s1 + $0x170] sm:$0xf] }
   0x9   :  { %88 = vst [vmem:[#allocation2 + $0x40] sm:$0x1] %v2556_v0  ;;  %v2403_v7 = vld [vmem:[%s3232_s1 + $0x174] sm:$0xf0]  ;;  %v1941_v8 = vor.u32 %v2387_v5, %v1940_v3  ;;  %v1868_v10 = vld [vmem:[%s3232_s1 + $0x60] sm:$0xf] }
   0xa   :  { %106 = vst [vmem:[#allocation2 + $0x71] sm:$0x1] %v2556_v0  ;;  %v2005_v9 = vor.u32 %v2403_v7, %v2004_v6  ;;  %v2369_v11 = vld [vmem:[%s3232_s1 + $0x64] sm:$0xf0]  ;;  %v1932_v12 = vld [vmem:[%s3232_s1 + $0xe0] sm:$0xf]  ;;  %416 = vmatpush.bf16.msra.mxu0 %v1877_v4 }
   0xb   :  { %v1869_v13 = vor.u32 %v2369_v11, %v1868_v10  ;;  %v2385_v14 = vld [vmem:[%s3232_s1 + $0xe4] sm:$0xf0]  ;;  %v1996_v15 = vld [vmem:[%s3232_s1 + $0x160] sm:$0xf]  ;;  %434 = vmatpush.bf16.msra.mxu1 %v1941_v8  ;;  %v1860_v19 = vld [vmem:[%s3232_s1 + $0x50] sm:$0xf] }
   0xc   :  { %v2401_v16 = vld [vmem:[%s3232_s1 + $0x164] sm:$0xf0]  ;;  %452 = vmatpush.bf16.msra.mxu2 %v2005_v9  ;;  %v1933_v17 = vor.u32 %v2385_v14, %v1932_v12  ;;  %v2367_v20 = vld [vmem:[%s3232_s1 + $0x54] sm:$0xf0]  ;;  %v1924_v21 = vld [vmem:[%s3232_s1 + $0xd0] sm:$0xf]  ;;  %v558_v9 = vlaneseq }
   0xd   :  { %v1997_v18 = vor.u32 %v2401_v16, %v1996_v15  ;;  %v2383_v22 = vld [vmem:[%s3232_s1 + $0xd4] sm:$0xf0]  ;;  %v1988_v23 = vld [vmem:[%s3232_s1 + $0x150] sm:$0xf]  ;;  %v1861_v25 = vor.u32 %v2367_v20, %v1860_v19  ;;  %v1852_v28 = vld [vmem:[%s3232_s1 + $0x40] sm:$0xf] }
   0xe   :  { %v2399_v24 = vld [vmem:[%s3232_s1 + $0x154] sm:$0xf0]  ;;  %417 = vmatpush.bf16.msra.mxu0 %v1869_v13  ;;  %v1925_v26 = vor.u32 %v2383_v22, %v1924_v21  ;;  %v2365_v29 = vld [vmem:[%s3232_s1 + $0x44] sm:$0xf0]  ;;  %v1916_v30 = vld [vmem:[%s3232_s1 + $0xc0] sm:$0xf] }
   0xf   :  { %435 = vmatpush.bf16.msra.mxu1 %v1933_v17  ;;  %v1989_v27 = vor.u32 %v2399_v24, %v1988_v23  ;;  %v2381_v31 = vld [vmem:[%s3232_s1 + $0xc4] sm:$0xf0]  ;;  %v1980_v32 = vld [vmem:[%s3232_s1 + $0x140] sm:$0xf]  ;;  %v2370_v34 = vld [vmem:[%s3232_s1 + $0x74] sm:$0xf]  ;;  %v1853_v36 = vor.u32 %v2365_v29, %v1852_v28 }
  0x10   :  { %453 = vmatpush.bf16.msra.mxu2 %v1997_v18  ;;  %v2397_v33 = vld [vmem:[%s3232_s1 + $0x144] sm:$0xf0]  ;;  %v1878_v35 = vld [vmem:[%s3232_s1 + $0x78] sm:$0xf0]  ;;  %v1844_v37 = vld [vmem:[%s3232_s1 + $0x30] sm:$0xf]  ;;  %v1917_v40 = vor.u32 %v2381_v31, %v1916_v30 }
  0x11   :  { %v2363_v38 = vld [vmem:[%s3232_s1 + $0x34] sm:$0xf0]  ;;  %v1881_v39 = vor.u32 %v2370_v34, %v1878_v35  ;;  %v1981_v41 = vor.u32 %v2397_v33, %v1980_v32  ;;  %v1908_v42 = vld [vmem:[%s3232_s1 + $0xb0] sm:$0xf]  ;;  %v2368_v44 = vld [vmem:[%s3232_s1 + $0x64] sm:$0xf] }
  0x12   :  { %418 = vmatpush.bf16.msra.mxu0 %v1861_v25  ;;  %v2379_v43 = vld [vmem:[%s3232_s1 + $0xb4] sm:$0xf0]  ;;  %v1972_v45 = vld [vmem:[%s3232_s1 + $0x130] sm:$0xf]  ;;  %v1870_v47 = vld [vmem:[%s3232_s1 + $0x68] sm:$0xf0]  ;;  %v1845_v49 = vor.u32 %v2363_v38, %v1844_v37 }
  0x13   :  { %436 = vmatpush.bf16.msra.mxu1 %v1925_v26  ;;  %v2395_v46 = vld [vmem:[%s3232_s1 + $0x134] sm:$0xf0]  ;;  %470 = vmatpush.bf16.msra.mxu3 %v1881_v39  ;;  %v1873_v48 = vor.u32 %v2368_v44, %v1870_v47  ;;  %v2366_v50 = vld [vmem:[%s3232_s1 + $0x54] sm:$0xf]  ;;  %v1862_v51 = vld [vmem:[%s3232_s1 + $0x58] sm:$0xf0]  ;;  %v1909_v52 = vor.u32 %v2379_v43, %v1908_v42 }
  0x14   :  { %454 = vmatpush.bf16.msra.mxu2 %v1989_v27  ;;  %v1973_v53 = vor.u32 %v2395_v46, %v1972_v45  ;;  %v1836_v54 = vld [vmem:[%s3232_s1 + $0x20] sm:$0xf]  ;;  %v2361_v55 = vld [vmem:[%s3232_s1 + $0x24] sm:$0xf0]  ;;  %v1865_v60 = vor.u32 %v2366_v50, %v1862_v51  ;;  %v1828_v61 = vld [vmem:[%s3232_s1 + $0x10] sm:$0xf] }
  0x15   :  { %v1900_v56 = vld [vmem:[%s3232_s1 + $0xa0] sm:$0xf]  ;;  %v2377_v57 = vld [vmem:[%s3232_s1 + $0xa4] sm:$0xf0]  ;;  %v2359_v62 = vld [vmem:[%s3232_s1 + $0x14] sm:$0xf0]  ;;  %v1837_v3 = vor.u32 %v2361_v55, %v1836_v54 }
  0x16   :  { %419 = vmatpush.bf16.msra.mxu0 %v1853_v36  ;;  %v1964_v58 = vld [vmem:[%s3232_s1 + $0x120] sm:$0xf]  ;;  %v2393_v59 = vld [vmem:[%s3232_s1 + $0x124] sm:$0xf0]  ;;  %v2364_v63 = vld [vmem:[%s3232_s1 + $0x44] sm:$0xf]  ;;  %v1901_v10 = vor.u32 %v2377_v57, %v1900_v56  ;;  %v1829_v21 = vor.u32 %v2359_v62, %v1828_v61 }
  0x17   :  { %437 = vmatpush.bf16.msra.mxu1 %v1917_v40  ;;  %471 = vmatpush.bf16.msra.mxu3 %v1873_v48  ;;  %v1854_v1 = vld [vmem:[%s3232_s1 + $0x48] sm:$0xf0]  ;;  %v2790_v2 = vld [vmem:[%s3231_s0] sm:$0xff]  ;;  %v1892_v4 = vld [vmem:[%s3232_s1 + $0x90] sm:$0xf]  ;;  %v1965_v11 = vor.u32 %v2393_v59, %v1964_v58  ;;  %vm2841_vm0 = vcmp.lt.s32.totalorder %v558_v9, 256 }
  0x18   :  { %455 = vmatpush.bf16.msra.mxu2 %v1981_v41  ;;  %v2375_v5 = vld [vmem:[%s3232_s1 + $0x94] sm:$0xf0]  ;;  %v1956_v6 = vld [vmem:[%s3232_s1 + $0x110] sm:$0xf]  ;;  %v75_v8 = vrot.slane %v2790_v2, 7  ;;  %79 = vst [vmem:[#allocation2 + $0x8] sm:$0xff] %v2790_v2  ;;  %v1857_v14 = vor.u32 %v2364_v63, %v1854_v1 }
  0x19   :  { %v2804_v7 = vld [vmem:[%s3231_s0 + $0x10] sm:$0xff]  ;;  %v2391_v12 = vld [vmem:[%s3232_s1 + $0x114] sm:$0xf0]  ;;  %v69_v15 = vld [vmem:[%s3231_s0 + $0x8] sm:$0x1]  ;;  %v1893_v27 = vor.u32 %v2375_v5, %v1892_v4  ;;  %v83_v30 = vrot.slane %v2790_v2, 1 }
  0x1a   :  { %420 = vmatpush.bf16.msra.mxu0 %v1845_v49  ;;  %v91_v13 = vrot.slane %v2804_v7, 6  ;;  %104 = vst [vmem:[#allocation2 + $0x40] sm:$0xfe] %v2804_v7  ;;  %v97_v16 = vrot.slane %v2804_v7, 7  ;;  %v1820_v17 = vld [vmem:[%s3232_s1] sm:$0xf]  ;;  %v1957_v28 = vor.u32 %v2391_v12, %v1956_v6 }
  0x1b   :  { %438 = vmatpush.bf16.msra.mxu1 %v1909_v52  ;;  %472 = vmatpush.bf16.msra.mxu3 %v1865_v60  ;;  %77 = vst [vmem:[#allocation2] sm:$0xfe] %v75_v8  ;;  %v2357_v18 = vld [vmem:[%s3232_s1 + $0x4] sm:$0xf0]  ;;  %v2362_v19 = vld [vmem:[%s3232_s1 + $0x34] sm:$0xf] }
  0x1c   :  { %456 = vmatpush.bf16.msra.mxu2 %v1973_v53  ;;  %78 = vst [vmem:[#allocation2 + $0x30] sm:$0x1] %v75_v8  ;;  %v1846_v20 = vld [vmem:[%s3232_s1 + $0x38] sm:$0xf0]  ;;  %v1884_v22 = vld [vmem:[%s3232_s1 + $0x80] sm:$0xf]  ;;  %v1821_v37 = vor.u32 %v2357_v18, %v1820_v17 }
  0x1d   :  { %v2373_v23 = vld [vmem:[%s3232_s1 + $0x84] sm:$0xf0]  ;;  %v1948_v24 = vld [vmem:[%s3232_s1 + $0x100] sm:$0xf]  ;;  %93 = vst [vmem:[#allocation2 + $0x30] sm:$0xfc] %v91_v13  ;;  %v1849_v33 = vor.u32 %v2362_v19, %v1846_v20 }
  0x1e   :  { %421 = vmatpush.bf16.msra.mxu0 %v1837_v3  ;;  %v2389_v25 = vld [vmem:[%s3232_s1 + $0x104] sm:$0xf0]  ;;  %94 = vst [vmem:[#allocation2 + $0x60] sm:$0x3] %v91_v13  ;;  %v84_v29 = vrot.slane %v69_v15, 1  ;;  %v1885_v39 = vor.u32 %v2373_v23, %v1884_v22  ;;  %vm96_vm2 = vcmask 1040384  }
  0x1f   :  { %439 = vmatpush.bf16.msra.mxu1 %v1901_v10  ;;  %v2386_v31 = vld [vmem:[%s3232_s1 + $0xf4] sm:$0xf]  ;;  %473 = vmatpush.bf16.msra.mxu3 %v1857_v14  ;;  %80 = vst [vmem:[#allocation2 + $0x38] sm:$0x1] %v69_v15  ;;  %v1942_v32 = vld [vmem:[%s3232_s1 + $0xf8] sm:$0xf0]  ;;  %v1949_v40 = vor.u32 %v2389_v25, %v1948_v24 }
  0x20   :  { %457 = vmatpush.bf16.msra.mxu2 %v1965_v11  ;;  %v2402_v34 = vld [vmem:[%s3232_s1 + $0x174] sm:$0xf]  ;;  %102 = vst [vmem:[#allocation2 + $0x38] sm:$0xfe] %v97_v16  ;;  %v2006_v35 = vld [vmem:[%s3232_s1 + $0x178] sm:$0xf0]  ;;  %v85_v42 = vsel %vm82_vm1, %v83_v30, %v84_v29  ;;  %v1945_v45 = vor.u32 %v2386_v31, %v1942_v32 }
  0x21   :  { %v2360_v36 = vld [vmem:[%s3232_s1 + $0x24] sm:$0xf]  ;;  %581 = vst.msk [vmem:[#allocation2 + $0x27] ss:$8 sm:$0x3] %vm2841_vm0, %v2556_v0  ;;  %v112_v43 = vld [vmem:[#allocation2 + $0x40] sm:$0xff]  ;;  %v2009_v46 = vor.u32 %v2402_v34, %v2006_v35 }
  0x22   :  { %422 = vmatpush.bf16.msra.mxu0 %v1829_v21  ;;  %v1838_v38 = vld [vmem:[%s3232_s1 + $0x28] sm:$0xf0]  ;;  %614 = vst.msk [vmem:[#allocation2 + $0x57] ss:$8 sm:$0x3] %vm2841_vm0, %v2556_v0  ;;  %v2888_v53 = vpack.c.bf16 %v112_v43, %v85_v42  ;;  %vm602_vm3 = vcmask 1045504  }
  0x23   :  { %440 = vmatpush.bf16.msra.mxu1 %v1893_v27  ;;  %v107_v41 = vld [vmem:[#allocation2] sm:$0xff]  ;;  %v2384_v44 = vld [vmem:[%s3232_s1 + $0xe4] sm:$0xf]  ;;  %474 = vmatpush.bf16.msra.mxu3 %v1849_v33  ;;  %v1841_v49 = vor.u32 %v2360_v36, %v1838_v38  ;;  %v2358_v54 = vld [vmem:[%s3232_s1 + $0x14] sm:$0xf]  ;;  %vm1396_vm4 = vcmask 516096  }
  0x24   :  { %458 = vmatpush.bf16.msra.mxu2 %v1957_v28  ;;  %562 = vst.msk [vmem:[#allocation2] ss:$8 sm:$0x3] %vm2841_vm0, %v2556_v0  ;;  %v1934_v47 = vld [vmem:[%s3232_s1 + $0xe8] sm:$0xf0]  ;;  %v110_v48 = vld [vmem:[#allocation2 + $0x30] sm:$0xff] }
  0x25   :  { %v2400_v50 = vld [vmem:[%s3232_s1 + $0x164] sm:$0xf]  ;;  %v1998_v51 = vld [vmem:[%s3232_s1 + $0x168] sm:$0xf0]  ;;  %v116_v52 = vpack.c.bf16 %v110_v48, %v107_v41  ;;  %v1830_v55 = vld [vmem:[%s3232_s1 + $0x18] sm:$0xf0]  ;;  %v1937_v60 = vor.u32 %v2384_v44, %v1934_v47 }
  0x26   :  { %423 = vmatpush.bf16.msra.mxu0 %v1821_v37  ;;  %v2382_v56 = vld [vmem:[%s3232_s1 + $0xd4] sm:$0xf]  ;;  %v1926_v57 = vld [vmem:[%s3232_s1 + $0xd8] sm:$0xf0]  ;;  %v2001_v61 = vor.u32 %v2400_v50, %v1998_v51  ;;  %v2356_v63 = vld [vmem:[%s3232_s1 + $0x4] sm:$0xf]  ;;  %v1833_v3 = vor.u32 %v2358_v54, %v1830_v55 }
  0x27   :  { %441 = vmatpush.bf16.msra.mxu1 %v1885_v39  ;;  %v2398_v58 = vld [vmem:[%s3232_s1 + $0x154] sm:$0xf]  ;;  %v111_v59 = vld [vmem:[#allocation2 + $0x38] sm:$0xff]  ;;  %v1990_v62 = vld [vmem:[%s3232_s1 + $0x158] sm:$0xf0]  ;;  %475 = vmatpush.bf16.msra.mxu3 %v1841_v49  ;;  %vm1410_vm5 = vcmask 520192  }
  0x28   :  { %459 = vmatpush.bf16.msra.mxu2 %v1949_v40  ;;  %v2912_v1 = vpack.c.bf16 %v111_v59, %v2790_v2  ;;  %584 = vst.msk [vmem:[#allocation2 + $0x30] ss:$8 sm:$0x3] %vm2841_vm0, %v2556_v0  ;;  %v1817_v4 = vld [vmem:[%s3231_s0 + $0x18] sm:$0x1]  ;;  %v1929_v2 = vor.u32 %v2382_v56, %v1926_v57  ;;  %v1993_v8 = vor.u32 %v2398_v58, %v1990_v62  ;;  %v2410_v47 = vld [vmem:[#allocation4 + $0x30] sm:$0xff] }
  0x29   :  { %424 = vmatmul.bf16.vlgmr.msra.gmra.mxu0 %v116_v52  ;;  %v1822_v5 = vld [vmem:[%s3232_s1 + $0x8] sm:$0xf0]  ;;  %v98_v6 = vrot.slane %v1817_v4, 7  ;;  %105 = vst [vmem:[#allocation2 + $0x70] sm:$0x1] %v1817_v4  ;;  %v2411_v38 = vld [vmem:[#allocation4 + $0x38] sm:$0xff] }
  0x2a   :  { %488 = vmatpush.bf16.msrb.mxu0 %v1945_v45  ;;  %442 = vmatmul.bf16.vlgmr.msra.gmra.mxu1 %v2912_v1  ;;  %v2380_v9 = vld [vmem:[%s3232_s1 + $0xc4] sm:$0xf]  ;;  %v1918_v10 = vld [vmem:[%s3232_s1 + $0xc8] sm:$0xf0]  ;;  %v1825_v12 = vor.u32 %v2356_v63, %v1822_v5  ;;  %v2378_v15 = vld [vmem:[%s3232_s1 + $0xb4] sm:$0xf] }
  0x2b   :  { %506 = vmatpush.bf16.msrb.mxu1 %v2009_v46  ;;  %460 = vmatmul.bf16.vlgmr.msra.gmra.mxu2 %v2888_v53  ;;  %v99_v11 = vsel %vm96_vm2, %v97_v16, %v98_v6  ;;  %v2396_v13 = vld [vmem:[%s3232_s1 + $0x144] sm:$0xf]  ;;  %v1982_v14 = vld [vmem:[%s3232_s1 + $0x148] sm:$0xf0]  ;;  %v1910_v7 = vld [vmem:[%s3232_s1 + $0xb8] sm:$0xf0]  ;;  %v1921_v16 = vor.u32 %v2380_v9, %v1918_v10 }
  0x2c   :  { %476 = vmatpush.bf16.msra.mxu3 %v1833_v3  ;;  %103 = vst [vmem:[#allocation2 + $0x68] sm:$0x3] %v99_v11  ;;  %v1985_v17 = vor.u32 %v2396_v13, %v1982_v14  ;;  %v2394_v18 = vld [vmem:[%s3232_s1 + $0x134] sm:$0xf]  ;;  %v1974_v19 = vld [vmem:[%s3232_s1 + $0x138] sm:$0xf0]  ;;  %v1913_v23 = vor.u32 %v2378_v15, %v1910_v7  ;;  %1022 = vmatpush.bf16.msrb.mxu2 %v2411_v38 }
  0x2d   :  { %v113_v20 = vld [vmem:[#allocation2 + $0x60] sm:$0x3]  ;;  %v1977_v24 = vor.u32 %v2394_v18, %v1974_v19  ;;  %v2376_v25 = vld [vmem:[%s3232_s1 + $0xa4] sm:$0xf]  ;;  %v1902_v27 = vld [vmem:[%s3232_s1 + $0xa8] sm:$0xf0] }
  0x2e   :  { %489 = vmatpush.bf16.msrb.mxu0 %v1937_v60  ;;  %v119_v26 = vpack.c.bf16 %v113_v20, %v113_v20  ;;  %v2392_v28 = vld [vmem:[%s3232_s1 + $0x124] sm:$0xf]  ;;  %v1966_v29 = vld [vmem:[%s3232_s1 + $0x128] sm:$0xf0]  ;;  %v1905_v32 = vor.u32 %v2376_v25, %v1902_v27  ;;  %v2374_v34 = vld [vmem:[%s3232_s1 + $0x94] sm:$0xf] }
  0x2f   :  { %507 = vmatpush.bf16.msrb.mxu1 %v2001_v61  ;;  %v1969_v33 = vor.u32 %v2392_v28, %v1966_v29  ;;  %v1894_v35 = vld [vmem:[%s3232_s1 + $0x98] sm:$0xf0]  ;;  %v2390_v36 = vld [vmem:[%s3232_s1 + $0x114] sm:$0xf]  ;;  %v2372_v41 = vld [vmem:[%s3232_s1 + $0x84] sm:$0xf] }
  0x30   :  { %477 = vmatpush.bf16.msra.mxu3 %v1825_v12  ;;  %v115_v21 = vld [vmem:[#allocation2 + $0x70] sm:$0x3]  ;;  %v1958_v37 = vld [vmem:[%s3232_s1 + $0x118] sm:$0xf0]  ;;  %v1897_v39 = vor.u32 %v2374_v34, %v1894_v35  ;;  %v1886_v42 = vld [vmem:[%s3232_s1 + $0x88] sm:$0xf0]  ;;  %1023 = vmatpush.bf16.msrb.mxu2 %v2410_v47 }
  0x31   :  { %v121_v30 = vpack.c.bf16 %v115_v21, %v115_v21  ;;  %v1961_v40 = vor.u32 %v2390_v36, %v1958_v37  ;;  %v2388_v43 = vld [vmem:[%s3232_s1 + $0x104] sm:$0xf]  ;;  %v1950_v44 = vld [vmem:[%s3232_s1 + $0x108] sm:$0xf0]  ;;  %v1889_v45 = vor.u32 %v2372_v41, %v1886_v42  ;;  %v2427_v49 = vld [vmem:[#allocation4 + $0xb8] sm:$0xff]  ;;  %vm1401_vm6 = vcmask 521217  }
  0x32   :  { %490 = vmatpush.bf16.msrb.mxu0 %v1929_v2  ;;  %v1953_v46 = vor.u32 %v2388_v43, %v1950_v44  ;;  %v2409_v48 = vld [vmem:[#allocation4 + $0x28] sm:$0xff]  ;;  %v2408_v50 = vld [vmem:[#allocation4 + $0x20] sm:$0xff]  ;;  %v2426_v51 = vld [vmem:[#allocation4 + $0xb0] sm:$0xff]  ;;  %vm1414_vm7 = vcmask 523271   ;;  %vm1416_vm8 = vcmask 519168   ;;  %vm1435_vm9 = vcmask 523270  }
  0x33   :  { %508 = vmatpush.bf16.msrb.mxu1 %v1993_v8  ;;  %v114_v22 = vld [vmem:[#allocation2 + $0x68] sm:$0x3]  ;;  %478 = vmatmul.bf16.vlgmr.msra.gmra.mxu3 %v116_v52  ;;  %v2407_v52 = vld [vmem:[#allocation4 + $0x18] sm:$0xff]  ;;  %v2425_v54 = vld [vmem:[#allocation4 + $0xa8] sm:$0xff]  ;;  %vm1437_vm10 = vcmask 518144   ;;  %vm1546_vm11 = vcmask 523264  }
  0x34   :  { %v120_v31 = vpack.c.bf16 %v114_v22, %v114_v22  ;;  %1024 = vmatpush.bf16.msrb.mxu2 %v2409_v48  ;;  %v2406_v55 = vld [vmem:[#allocation4 + $0x10] sm:$0xff]  ;;  %v2424_v56 = vld [vmem:[#allocation4 + $0xa0] sm:$0xff]  ;;  %v2423_v57 = vld [vmem:[#allocation4 + $0x98] sm:$0xff]  ;;  %vm1406_vm12 = vcmask 1046016   ;;  %vm1431_vm13 = vcmask 1043968   ;;  %vm1429_vm14 = vcmask 1048070  }
  0x35   :  { %v2404_v58 = vld [vmem:[#allocation4] sm:$0xff]  ;;  %v2419_v59 = vld [vmem:[#allocation4 + $0x78] sm:$0xff]  ;;  %v2422_v60 = vld [vmem:[#allocation4 + $0x90] sm:$0xff]  ;;  %vm1591_vm15 = vcmask 253952   ;;  %vm1599_vm0 = vcmask 516352   ;;  %vm1739_vm2 = vcmask 1041408  }
  0x36   :  { %491 = vmatpush.bf16.msrb.mxu0 %v1921_v16  ;;  %v2443_v61 = vld [vmem:[#allocation4 + $0x138] sm:$0xff]  ;;  %1036 = vmatpush.bf16.msrb.mxu3 %v2419_v59  ;;  %v2992_v62 = vld [vmem:[%s3233_s2] sm:$0x3]  ;;  %v2418_v63 = vld [vmem:[#allocation4 + $0x70] sm:$0xff]  ;;  %s2559_s30 = smov [#allocation7]  }
  0x37   :  { %509 = vmatpush.bf16.msrb.mxu1 %v1985_v17  ;;  %v2442_v4 = vld [vmem:[#allocation4 + $0x130] sm:$0xff]  ;;  %v172_v5 = vperm.slane %v2992_v62, 0  ;;  %v2417_v2 = vld [vmem:[#allocation4 + $0x68] sm:$0xff]  ;;  %v2420_v8 = vld [vmem:[#allocation4 + $0x80] sm:$0xff] }
  0x38   :  { %1025 = vmatpush.bf16.msrb.mxu2 %v2408_v50  ;;  %v2435_v9 = vld [vmem:[#allocation4 + $0xf8] sm:$0xff]  ;;  %v2441_v10 = vld [vmem:[#allocation4 + $0x128] sm:$0xff]  ;;  %v2416_v13 = vld [vmem:[#allocation4 + $0x60] sm:$0xff] }
  0x39   :  { %429 = vmatmul.bf16.gmra.mxu0 %v119_v26  ;;  %v2440_v14 = vld [vmem:[#allocation4 + $0x120] sm:$0xff]  ;;  %v2434_v15 = vld [vmem:[#allocation4 + $0xf0] sm:$0xff]  ;;  %v2415_v19 = vld [vmem:[#allocation4 + $0x58] sm:$0xff] }
  0x3a   :  { %492 = vmatpush.bf16.msrb.mxu0 %v1913_v23  ;;  %447 = vmatmul.bf16.gmra.mxu1 %v120_v31  ;;  %v2433_v20 = vld [vmem:[#allocation4 + $0xe8] sm:$0xff]  ;;  %v2439_v22 = vld [vmem:[#allocation4 + $0x118] sm:$0xff]  ;;  %v2414_v25 = vld [vmem:[#allocation4 + $0x50] sm:$0xff] }
  0x3b   :  { %510 = vmatpush.bf16.msrb.mxu1 %v1977_v24  ;;  %465 = vmatmul.bf16.gmra.mxu2 %v121_v30  ;;  %v2413_v35 = vld [vmem:[#allocation4 + $0x48] sm:$0xff]  ;;  %v2431_v36 = vld [vmem:[#allocation4 + $0xd8] sm:$0xff]  ;;  %v2412_v44 = vld [vmem:[#allocation4 + $0x40] sm:$0xff] }
  0x3c   :  { %1026 = vmatpush.bf16.msrb.mxu2 %v2407_v52  ;;  %1037 = vmatpush.bf16.msrb.mxu3 %v2418_v63  ;;  %v2436_v48 = vld [vmem:[#allocation4 + $0x100] sm:$0xff] }
  0x3e   :  { %493 = vmatpush.bf16.msrb.mxu0 %v1905_v32 }
  0x3f   :  { %511 = vmatpush.bf16.msrb.mxu1 %v1969_v33 }
  0x40   :  { %1027 = vmatpush.bf16.msrb.mxu2 %v2406_v55  ;;  %1038 = vmatpush.bf16.msrb.mxu3 %v2417_v2  ;;  %v2449_v2 = vld [vmem:[#allocation4 + $0x168] sm:$0xff] }
  0x42   :  { %494 = vmatpush.bf16.msrb.mxu0 %v1897_v39  ;;  %v2437_v39 = vld [vmem:[#allocation4 + $0x108] sm:$0xff] }
  0x43   :  { %512 = vmatpush.bf16.msrb.mxu1 %v1961_v40  ;;  %483 = vmatmul.bf16.gmra.mxu3 %v119_v26  ;;  %v2432_v26 = vld [vmem:[#allocation4 + $0xe0] sm:$0xff] }
  0x44   :  { %1039 = vmatpush.bf16.msrb.mxu3 %v2416_v13 }
  0x46   :  { %495 = vmatpush.bf16.msrb.mxu0 %v1889_v45  ;;  %v2430_v45 = vld [vmem:[#allocation4 + $0xd0] sm:$0xff] }
  0x47   :  { %513 = vmatpush.bf16.msrb.mxu1 %v1953_v46 }
  0x48   :  { %1040 = vmatpush.bf16.msrb.mxu3 %v2415_v19 }
  0x49   :  { %496 = vmatmul.bf16.vlgmr.msrb.gmra.mxu0 %v2912_v1  ;;  %v2421_v1 = vld [vmem:[#allocation4 + $0x88] sm:$0xff] }
  0x4a   :  { %514 = vmatmul.bf16.vlgmr.msrb.gmra.mxu1 %v2888_v53  ;;  %1050 = vmatpush.bf16.msra.mxu0 %v2427_v49  ;;  %v2405_v53 = vld [vmem:[#allocation4 + $0x8] sm:$0xff]  ;;  %v2451_v49 = vld [vmem:[#allocation4 + $0x178] sm:$0xff] }
  0x4b   :  { %1028 = vmatpush.bf16.msrb.mxu2 %v2405_v53  ;;  %1064 = vmatpush.bf16.msra.mxu1 %v2435_v9  ;;  %v2429_v53 = vld [vmem:[#allocation4 + $0xc8] sm:$0xff] }
  0x4c   :  { %1041 = vmatpush.bf16.msrb.mxu3 %v2414_v25  ;;  %v2446_v25 = vld [vmem:[#allocation4 + $0x150] sm:$0xff] }
  0x4e   :  { %1051 = vmatpush.bf16.msra.mxu0 %v2426_v51 }
  0x4f   :  { %1029 = vmatpush.bf16.msrb.mxu2 %v2404_v58  ;;  %1065 = vmatpush.bf16.msra.mxu1 %v2434_v15  ;;  %v2450_v58 = vld [vmem:[#allocation4 + $0x170] sm:$0xff] }
  0x50   :  { %1042 = vmatpush.bf16.msrb.mxu3 %v2413_v35 }
  0x52   :  { %1052 = vmatpush.bf16.msra.mxu0 %v2425_v54 }
  0x53   :  { %1078 = vmatpush.bf16.msra.mxu2 %v2443_v61  ;;  %1066 = vmatpush.bf16.msra.mxu1 %v2433_v20 }
  0x54   :  { %1043 = vmatpush.bf16.msrb.mxu3 %v2412_v44 }
  0x56   :  { %1053 = vmatpush.bf16.msra.mxu0 %v2424_v56  ;;  %v173_v56 = vperm.slane %v2992_v62, 1 }
  0x57   :  { %1079 = vmatpush.bf16.msra.mxu2 %v2442_v4  ;;  %1067 = vmatpush.bf16.msra.mxu1 %v2432_v26 }
  0x58   :  { %1092 = vmatpush.bf16.msra.mxu3 %v2451_v49 }
  0x59   :  { %501 = vmatmul.bf16.gmra.mxu0 %v120_v31 }
  0x5a   :  { %519 = vmatmul.bf16.gmra.mxu1 %v121_v30  ;;  %1054 = vmatpush.bf16.msra.mxu0 %v2423_v57  ;;  %v2438_v30 = vld [vmem:[#allocation4 + $0x110] sm:$0xff] }
  0x5b   :  { %1080 = vmatpush.bf16.msra.mxu2 %v2441_v10  ;;  %1068 = vmatpush.bf16.msra.mxu1 %v2431_v36 }
  0x5c   :  { %1093 = vmatpush.bf16.msra.mxu3 %v2450_v58 }
  0x5e   :  { %1055 = vmatpush.bf16.msra.mxu0 %v2422_v60 }
  0x5f   :  { %1081 = vmatpush.bf16.msra.mxu2 %v2440_v14  ;;  %1069 = vmatpush.bf16.msra.mxu1 %v2430_v45 }
  0x60   :  { %1094 = vmatpush.bf16.msra.mxu3 %v2449_v2  ;;  %v2458_v2 = vld [vmem:[%s3236_s5 + $0x30] sm:$0xff] }
  0x62   :  { %1056 = vmatpush.bf16.msra.mxu0 %v2421_v1 }
  0x63   :  { %1082 = vmatpush.bf16.msra.mxu2 %v2439_v22  ;;  %1070 = vmatpush.bf16.msra.mxu1 %v2429_v53 }
  0x66   :  { %1057 = vmatpush.bf16.msra.mxu0 %v2420_v8 }
  0x67   :  { %1083 = vmatpush.bf16.msra.mxu2 %v2438_v30  ;;  %v2445_v30 = vld [vmem:[#allocation4 + $0x148] sm:$0xff] }
  0x6b   :  { %1084 = vmatpush.bf16.msra.mxu2 %v2437_v39 }
  0x6f   :  { %1085 = vmatpush.bf16.msra.mxu2 %v2436_v48 }
  0xa6   :  { %v425_v3 = vpop.f32.mrf.mxu0 }
  0xa7   :  { %v443_v6 = vpop.f32.mrf.mxu1  ;;  %v426_v11 = vadd.f32 %v425_v3, %v172_v5  ;;  %v2428_v3 = vld [vmem:[#allocation4 + $0xc0] sm:$0xff] }
  0xa8   :  { %1071 = vmatpush.bf16.msra.mxu1 %v2428_v3 }
  0xa9   :  { %v444_v16 = vadd.f32 %v443_v6, %v426_v11 }
  0xae   :  { %v461_v12 = vpop.f32.mrf.mxu2  ;;  %v427_v7 = vpop.f32.mrf.mxu0 }
  0xaf   :  { %v428_v17 = vadd.f32 %v427_v7, %v172_v5  ;;  %v445_v18 = vpop.f32.mrf.mxu1  ;;  %v462_v21 = vadd.f32 %v461_v12, %v444_v16  ;;  %v2448_v12 = vld [vmem:[#allocation4 + $0x160] sm:$0xff]  ;;  %v2447_v16 = vld [vmem:[#allocation4 + $0x158] sm:$0xff] }
  0xb0   :  { %1095 = vmatpush.bf16.msra.mxu3 %v2448_v12 }
  0xb1   :  { %v446_v23 = vadd.f32 %v445_v18, %v428_v17  ;;  %v524_v27 = vmax.f32 %v462_v21, 0.0 }
  0xb3   :  { %v534_v37 = vrot.slane %v524_v27, 1 }
  0xb4   :  { %1096 = vmatpush.bf16.msra.mxu3 %v2447_v16  ;;  %v2455_v16 = vld [vmem:[%s3236_s5 + $0x18] sm:$0xff] }
  0xb6   :  { %v463_v24 = vpop.f32.mrf.mxu2  ;;  %v430_v29 = vpop.f32.mrf.mxu0 }
  0xb7   :  { %v464_v28 = vadd.f32 %v463_v24, %v446_v23  ;;  %v431_v32 = vadd.f32 %v430_v29, %v172_v5  ;;  %v448_v33 = vpop.f32.mrf.mxu1  ;;  %v479_v34 = vpop.f32.mrf.mxu3 }
  0xb8   :  { %v480_v63 = vadd.f32 %v479_v34, %v173_v56  ;;  %1097 = vmatpush.bf16.msra.mxu3 %v2446_v25  ;;  %v2470_v25 = vld [vmem:[%s3236_s5 + $0x90] sm:$0xff] }
  0xb9   :  { %v526_v31 = vmax.f32 %v464_v28, 0.0  ;;  %v449_v41 = vadd.f32 %v448_v33, %v431_v32 }
  0xbb   :  { %v535_v38 = vrot.slane %v526_v31, 1 }
  0xbc   :  { %1098 = vmatpush.bf16.msra.mxu3 %v2445_v30 }
  0xbd   :  { %v536_v40 = vsel %vm82_vm1, %v534_v37, %v535_v38 }
  0xbe   :  { %v542_v42 = vmax.f32 %v524_v27, %v536_v40  ;;  %v466_v43 = vpop.f32.mrf.mxu2  ;;  %v432_v47 = vpop.f32.mrf.mxu0 }
  0xbf   :  { %v467_v46 = vadd.f32 %v466_v43, %v449_v41  ;;  %v450_v54 = vpop.f32.mrf.mxu1  ;;  %v481_v55 = vpop.f32.mrf.mxu3 }
  0xc0   :  { %v566_v50 = vrot.slane %v542_v42, 7  ;;  %572 = vst [vmem:[#allocation2 + $0x10] sm:$0xff] %v542_v42  ;;  %v574_v51 = vrot.slane %v542_v42, 1  ;;  %v482_v17 = vadd.f32 %v481_v55, %v173_v56 }
  0xc1   :  { %v528_v52 = vmax.f32 %v467_v46, 0.0  ;;  %1125 = vst [vmem:[#allocation2 + $0x16] sm:$0x1] %v2556_v0 }
  0xc2   :  { %570 = vst [vmem:[#allocation2] sm:$0xfe] %v566_v50 }
  0xc3   :  { %578 = vst [vmem:[#allocation2 + $0x20] sm:$0x7f] %v574_v51  ;;  %v546_v57 = vrot.slane %v528_v52, 1 }
  0xc5   :  { %v547_v59 = vsel %vm82_vm1, %v535_v38, %v546_v57  ;;  %v556_v60 = vmax.f32 %v528_v52, %v546_v57  ;;  %v2444_v38 = vld [vmem:[#allocation4 + $0x140] sm:$0xff] }
  0xc6   :  { %v554_v61 = vmax.f32 %v526_v31, %v547_v59  ;;  %v468_v1 = vpop.f32.mrf.mxu2  ;;  %v497_v6 = vpop.f32.mrf.mxu0  ;;  %1099 = vmatpush.bf16.msra.mxu3 %v2444_v38 }
  0xc7   :  { %v593_v4 = vrot.slane %v556_v60, 1  ;;  %v604_v5 = vrot.slane %v556_v60, 2  ;;  %v515_v10 = vpop.f32.mrf.mxu1  ;;  %v484_v11 = vpop.f32.mrf.mxu3  ;;  %v498_v15 = vadd.f32 %v497_v6, %v480_v63  ;;  %v2475_v6 = vld [vmem:[%s3236_s5 + $0xb8] sm:$0xff] }
  0xc8   :  { %586 = vst [vmem:[#allocation2 + $0x30] sm:$0xfe] %v554_v61  ;;  %v592_v62 = vrot.slane %v554_v61, 1  ;;  %v603_v8 = vrot.slane %v554_v61, 2  ;;  %v485_v28 = vadd.f32 %v484_v11, %v173_v56  ;;  %v2473_v11 = vld [vmem:[%s3236_s5 + $0xa8] sm:$0xff] }
  0xc9   :  { %v616_v9 = vld [vmem:[#allocation2] sm:$0xff]  ;;  %v516_v18 = vadd.f32 %v515_v10, %v498_v15  ;;  %v2472_v15 = vld [vmem:[%s3236_s5 + $0xa0] sm:$0xff] }
  0xca   :  { %1126 = vst [vmem:[#allocation2 + $0x7] sm:$0x1] %v2556_v0  ;;  %v594_v13 = vsel %vm82_vm1, %v592_v62, %v593_v4  ;;  %v605_v14 = vsel %vm602_vm3, %v603_v8, %v604_v5  ;;  %v620_v46 = vld [vmem:[#allocation2 + $0x20] sm:$0xff]  ;;  %v2459_v4 = vld [vmem:[%s3236_s5 + $0x38] sm:$0xff]  ;;  %v2466_v62 = vld [vmem:[%s3236_s5 + $0x70] sm:$0xff] }
  0xcb   :  { %1116 = vst [vmem:[#allocation2] sm:$0x1] %v2556_v0  ;;  %v630_v7 = vpack.c.bf16 %v594_v13, %v542_v42  ;;  %v525_v26 = vmax.f32 %v516_v18, 0.0  ;;  %v2467_v5 = vld [vmem:[%s3236_s5 + $0x78] sm:$0xff]  ;;  %1343 = vmatpush.bf16.msrb.mxu0 %v2459_v4  ;;  %v2474_v8 = vld [vmem:[%s3236_s5 + $0xb0] sm:$0xff]  ;;  %v2465_v10 = vld [vmem:[%s3236_s5 + $0x68] sm:$0xff] }
  0xcc   :  { %600 = vst [vmem:[#allocation2 + $0x40] sm:$0xff] %v594_v13  ;;  %1357 = vmatpush.bf16.msrb.mxu1 %v2467_v5  ;;  %v2456_v13 = vld [vmem:[%s3236_s5 + $0x20] sm:$0xff]  ;;  %v2471_v18 = vld [vmem:[%s3236_s5 + $0x98] sm:$0xff] }
  0xcd   :  { %611 = vst [vmem:[#allocation2 + $0x50] sm:$0x7f] %v605_v14  ;;  %1058 = vmatmul.bf16.vlgmr.msra.gmra.mxu0 %v630_v7  ;;  %v537_v31 = vrot.slane %v525_v26, 1  ;;  %v2464_v14 = vld [vmem:[%s3236_s5 + $0x60] sm:$0xff] }
  0xce   :  { %1137 = vst [vmem:[#allocation2 + $0x45] sm:$0x1] %v2556_v0  ;;  %v499_v19 = vpop.f32.mrf.mxu0  ;;  %v2495_v7 = vld [vmem:[%s3235_s4] ss:$0 sm:$0xff] }
  0xcf   :  { %v622_v20 = vld [vmem:[#allocation2 + $0x30] sm:$0xff]  ;;  %v500_v21 = vadd.f32 %v499_v19, %v482_v17  ;;  %v517_v23 = vpop.f32.mrf.mxu1  ;;  %v486_v24 = vpop.f32.mrf.mxu3  ;;  %1344 = vmatpush.bf16.msrb.mxu0 %v2458_v2 }
  0xd0   :  { %v628_v22 = vpack.c.bf16 %v622_v20, %v616_v9  ;;  %1358 = vmatpush.bf16.msrb.mxu1 %v2466_v62  ;;  %v2457_v9 = vld [vmem:[%s3236_s5 + $0x28] sm:$0xff]  ;;  %v2463_v17 = vld [vmem:[%s3236_s5 + $0x58] sm:$0xff]  ;;  %v2462_v24 = vld [vmem:[%s3236_s5 + $0x50] sm:$0xff] }
  0xd1   :  { %v518_v27 = vadd.f32 %v517_v23, %v500_v21  ;;  %v2454_v21 = vld [vmem:[%s3236_s5 + $0x10] sm:$0xff] }
  0xd2   :  { %1030 = vmatmul.bf16.vlgmr.msrb.gmra.mxu2 %v628_v22 }
  0xd3   :  { %v527_v29 = vmax.f32 %v518_v27, 0.0  ;;  %1371 = vmatpush.bf16.msrb.mxu2 %v2475_v6  ;;  %1345 = vmatpush.bf16.msrb.mxu0 %v2457_v9  ;;  %v2453_v27 = vld [vmem:[%s3236_s5 + $0x8] sm:$0xff]  ;;  %v2486_v9 = vld [vmem:[%s3238_s7 + $0x50] sm:$0xff] }
  0xd4   :  { %v626_v43 = vld [vmem:[#allocation2 + $0x50] sm:$0xff]  ;;  %1359 = vmatpush.bf16.msrb.mxu1 %v2465_v10  ;;  %v2485_v10 = vld [vmem:[%s3238_s7 + $0x48] sm:$0xff] }
  0xd5   :  { %v538_v32 = vrot.slane %v527_v29, 1  ;;  %v632_v49 = vpack.c.bf16 %v626_v43, %v620_v46 }
  0xd6   :  { %v502_v33 = vpop.f32.mrf.mxu0 }
  0xd7   :  { %v539_v34 = vsel %vm82_vm1, %v537_v31, %v538_v32  ;;  %v503_v35 = vadd.f32 %v502_v33, %v485_v28  ;;  %v520_v37 = vpop.f32.mrf.mxu1  ;;  %1372 = vmatpush.bf16.msrb.mxu2 %v2474_v8  ;;  %1346 = vmatpush.bf16.msrb.mxu0 %v2456_v13  ;;  %v2461_v28 = vld [vmem:[%s3236_s5 + $0x48] sm:$0xff]  ;;  %v2452_v31 = vld [vmem:[%s3236_s5] sm:$0xff]  ;;  %v2487_v8 = vld [vmem:[%s3238_s7 + $0x58] sm:$0xff] }
  0xd8   :  { %v543_v36 = vmax.f32 %v525_v26, %v539_v34  ;;  %1360 = vmatpush.bf16.msrb.mxu1 %v2464_v14 }
  0xd9   :  { %v521_v39 = vadd.f32 %v520_v37, %v503_v35  ;;  %v2460_v35 = vld [vmem:[%s3236_s5 + $0x40] sm:$0xff] }
  0xda   :  { %v567_v40 = vrot.slane %v543_v36, 7  ;;  %v575_v41 = vrot.slane %v543_v36, 1 }
  0xdb   :  { %v529_v42 = vmax.f32 %v521_v39, 0.0  ;;  %1373 = vmatpush.bf16.msrb.mxu2 %v2473_v11  ;;  %1347 = vmatpush.bf16.msrb.mxu0 %v2455_v16  ;;  %v2496_v11 = vld [vmem:[%s3237_s6] ss:$0 sm:$0xff]  ;;  %s1806_s6 = sshll.u32 %s3246_s15, 4  ;;  %s1807_s6 = int_to_ptr.hbm [resolvable:$true] %s1806_s6 }
  0xdc   :  { %571 = vst [vmem:[#allocation2 + $0x8] sm:$0xfe] %v567_v40  ;;  %1361 = vmatpush.bf16.msrb.mxu1 %v2463_v17 }
  0xdd   :  { %579 = vst [vmem:[#allocation2 + $0x28] sm:$0x7f] %v575_v41  ;;  %v548_v44 = vrot.slane %v529_v42, 1 }
  0xde   :  { %v504_v45 = vpop.f32.mrf.mxu0 }
  0xdf   :  { %v549_v47 = vsel %vm82_vm1, %v538_v32, %v548_v44  ;;  %v557_v48 = vmax.f32 %v529_v42, %v548_v44  ;;  %v522_v51 = vpop.f32.mrf.mxu1  ;;  %1374 = vmatpush.bf16.msrb.mxu2 %v2472_v15  ;;  %1348 = vmatpush.bf16.msrb.mxu0 %v2454_v21  ;;  %v2483_v15 = vld [vmem:[%s3238_s7 + $0x38] sm:$0xff] }
  0xe0   :  { %v555_v50 = vmax.f32 %v527_v29, %v549_v47  ;;  %1362 = vmatpush.bf16.msrb.mxu1 %v2462_v24  ;;  %v2469_v29 = vld [vmem:[%s3236_s5 + $0x88] sm:$0xff] }
  0xe1   :  { %v596_v52 = vrot.slane %v557_v48, 1  ;;  %v607_v54 = vrot.slane %v557_v48, 2 }
  0xe2   :  { %1086 = vmatmul.bf16.vlgmr.msra.gmra.mxu2 %v632_v49  ;;  %587 = vst [vmem:[#allocation2 + $0x38] sm:$0xfe] %v555_v50  ;;  %v595_v55 = vrot.slane %v555_v50, 1  ;;  %v606_v56 = vrot.slane %v555_v50, 2 }
  0xe3   :  { %v617_v59 = vld [vmem:[#allocation2 + $0x8] sm:$0xff]  ;;  %1375 = vmatpush.bf16.msrb.mxu2 %v2471_v18  ;;  %1349 = vmatpush.bf16.msrb.mxu0 %v2453_v27 }
  0xe4   :  { %v597_v53 = vsel %vm82_vm1, %v595_v55, %v596_v52  ;;  %v608_v57 = vsel %vm602_vm3, %v606_v56, %v607_v54  ;;  %v621_v1 = vld [vmem:[#allocation2 + $0x28] sm:$0xff]  ;;  %1363 = vmatpush.bf16.msrb.mxu1 %v2461_v28  ;;  %vm1617_vm3 = vcmask 1041152  }
  0xe5   :  { %v631_v58 = vpack.c.bf16 %v597_v53, %v543_v36  ;;  %612 = vst [vmem:[#allocation2 + $0x58] sm:$0x7f] %v608_v57  ;;  %v2468_v36 = vld [vmem:[%s3236_s5 + $0x80] sm:$0xff]  ;;  %v2482_v18 = vld [vmem:[%s3238_s7 + $0x30] sm:$0xff] }
  0xe7   :  { %1072 = vmatmul.bf16.vlgmr.msra.gmra.mxu1 %v631_v58  ;;  %1376 = vmatpush.bf16.msrb.mxu2 %v2470_v25 }
  0xe8   :  { %1350 = vmatpush.bf16.msrb.mxu0 %v2452_v31  ;;  %1364 = vmatpush.bf16.msrb.mxu1 %v2460_v35 }
  0xe9   :  { %v623_v60 = vld [vmem:[#allocation2 + $0x38] sm:$0xff] }
  0xea   :  { %v629_v61 = vpack.c.bf16 %v623_v60, %v617_v59 }
  0xeb   :  { %1377 = vmatpush.bf16.msrb.mxu2 %v2469_v29 }
  0xec   :  { %1044 = vmatmul.bf16.vlgmr.msrb.gmra.mxu3 %v629_v61  ;;  %v627_v63 = vld [vmem:[#allocation2 + $0x58] sm:$0xff]  ;;  %1568 = vmatpush.bf16.msra.mxu0 %v2487_v8 }
  0xed   :  { %v633_v3 = vpack.c.bf16 %v627_v63, %v621_v1  ;;  %1550 = vmatpush.bf16.msrb.mxu3 %v2483_v15 }
  0xef   :  { %1378 = vmatpush.bf16.msrb.mxu2 %v2468_v36 }
  0xf0   :  { %1569 = vmatpush.bf16.msra.mxu0 %v2486_v9 }
  0xf1   :  { %1551 = vmatpush.bf16.msrb.mxu3 %v2482_v18  ;;  %v1669_v18 = vld [vmem:[%s3240_s9 + $0x68] sm:$0xff] }
  0xf4   :  { %1570 = vmatpush.bf16.msra.mxu0 %v2485_v10 }
  0xfc   :  { %1100 = vmatmul.bf16.vlgmr.msra.gmra.mxu3 %v633_v3 }
 0x14a   :  { %v1059_v26 = vpop.f32.mrf.mxu0 }
 0x152   :  { %v1061_v40 = vpop.f32.mrf.mxu0 }
 0x155   :  { %v1031_v12 = vpop.f32.mrf.mxu2 }
 0x156   :  { %v1032_v20 = vadd.f32 %v2495_v7, %v1031_v12  ;;  %v2484_v12 = vld [vmem:[%s3238_s7 + $0x40] sm:$0xff] }
 0x157   :  { %1571 = vmatpush.bf16.msra.mxu0 %v2484_v12 }
 0x15d   :  { %v1033_v22 = vpop.f32.mrf.mxu2 }
 0x15e   :  { %v1034_v34 = vadd.f32 %v2495_v7, %v1033_v22 }
 0x164   :  { %v1073_v32 = vpop.f32.mrf.mxu1 }
 0x165   :  { %v1087_v39 = vpop.f32.mrf.mxu2 }
 0x16c   :  { %v1075_v45 = vpop.f32.mrf.mxu1 }
 0x16d   :  { %v1089_v49 = vpop.f32.mrf.mxu2 }
 0x16f   :  { %v1045_v19 = vpop.f32.mrf.mxu3 }
 0x170   :  { %v1046_v23 = vadd.f32 %v1045_v19, %v1032_v20 }
 0x172   :  { %v1060_v30 = vadd.f32 %v1059_v26, %v1046_v23  ;;  %v2481_v23 = vld [vmem:[%s3238_s7 + $0x28] sm:$0xff] }
 0x173   :  { %1552 = vmatpush.bf16.msrb.mxu3 %v2481_v23  ;;  %v1664_v23 = vld [vmem:[%s3240_s9 + $0x40] sm:$0xff] }
 0x174   :  { %v1074_v38 = vadd.f32 %v1073_v32, %v1060_v30 }
 0x176   :  { %v1088_v42 = vadd.f32 %v1087_v39, %v1074_v38 }
 0x177   :  { %v1047_v33 = vpop.f32.mrf.mxu3 }
 0x178   :  { %v1048_v37 = vadd.f32 %v1047_v33, %v1034_v34 }
 0x17a   :  { %v1062_v41 = vadd.f32 %v1061_v40, %v1048_v37 }
 0x17c   :  { %v1076_v47 = vadd.f32 %v1075_v45, %v1062_v41  ;;  %v2477_v45 = vld [vmem:[%s3238_s7 + $0x8] sm:$0xff] }
 0x17e   :  { %v1090_v51 = vadd.f32 %v1089_v49, %v1076_v47 }
 0x17f   :  { %v1101_v43 = vpop.f32.mrf.mxu3 }
 0x180   :  { %v1102_v44 = vadd.f32 %v1101_v43, %v1088_v42  ;;  %v2480_v42 = vld [vmem:[%s3238_s7 + $0x20] sm:$0xff]  ;;  %v2479_v43 = vld [vmem:[%s3238_s7 + $0x18] sm:$0xff] }
 0x181   :  { %1553 = vmatpush.bf16.msrb.mxu3 %v2480_v42 }
 0x182   :  { %v1106_v46 = vmax.f32 %v1102_v44, 0.0  ;;  %v2478_v44 = vld [vmem:[%s3238_s7 + $0x10] sm:$0xff] }
 0x184   :  { %v1109_v48 = vrot.slane %v1106_v46, 1 }
 0x185   :  { %1554 = vmatpush.bf16.msrb.mxu3 %v2479_v43 }
 0x186   :  { %v1111_v50 = vmax.f32 %v1106_v46, %v1109_v48  ;;  %v2476_v46 = vld [vmem:[%s3238_s7] sm:$0xff]  ;;  %s2557_s7 = smov 32  }
 0x187   :  { %v1103_v52 = vpop.f32.mrf.mxu3 }
 0x188   :  { %v1118_v54 = vrot.slane %v1111_v50, 7  ;;  %1121 = vst [vmem:[#allocation2 + $0x8] sm:$0x7f] %v1111_v50  ;;  %v1122_v55 = vrot.slane %v1111_v50, 1  ;;  %v1104_v56 = vadd.f32 %v1103_v52, %v1090_v51 }
 0x189   :  { %1555 = vmatpush.bf16.msrb.mxu3 %v2478_v44 }
 0x18a   :  { %1120 = vst [vmem:[#allocation2] sm:$0x7e] %v1118_v54  ;;  %v1107_v53 = vmax.f32 %v1104_v56, 0.0  ;;  %v2497_v54 = vld [vmem:[%s3239_s8] ss:$0 sm:$0xff]  ;;  %s2558_s8 = smov 96  }
 0x18b   :  { %1124 = vst [vmem:[#allocation2 + $0x10] sm:$0x3f] %v1122_v55 }
 0x18c   :  { %v1113_v57 = vrot.slane %v1107_v53, 1 }
 0x18d   :  { %1556 = vmatpush.bf16.msrb.mxu3 %v2477_v45 }
 0x18e   :  { %v1115_v58 = vmax.f32 %v1107_v53, %v1113_v57 }
 0x190   :  { %1127 = vst [vmem:[#allocation2 + $0x30] sm:$0x3f] %v1115_v58  ;;  %v1129_v59 = vrot.slane %v1115_v58, 1  ;;  %v1133_v60 = vrot.slane %v1115_v58, 2 }
 0x191   :  { %v1138_v61 = vld [vmem:[#allocation2] sm:$0xff]  ;;  %1557 = vmatpush.bf16.msrb.mxu3 %v2476_v46 }
 0x192   :  { %1131 = vst [vmem:[#allocation2 + $0x8] sm:$0x80] %v1129_v59 }
 0x193   :  { %1132 = vst [vmem:[#allocation2 + $0x38] sm:$0x3f] %v1129_v59 }
 0x194   :  { %1135 = vst [vmem:[#allocation2 + $0x10] sm:$0x80] %v1133_v60 }
 0x195   :  { %1136 = vst [vmem:[#allocation2 + $0x40] sm:$0x1f] %v1133_v60 }
 0x196   :  { %1397 = vst.msk [vmem:[#allocation2] sm:$0x1] %vm1396_vm4, %v2556_v0 }
 0x197   :  { %v1141_v63 = vld [vmem:[#allocation2 + $0x30] sm:$0x3f]  ;;  %1413 = vst.msk [vmem:[#allocation2 + $0x6] sm:$0x1] %vm1396_vm4, %v2556_v0 }
 0x198   :  { %v1144_v1 = vpack.c.bf16 %v1141_v63, %v1138_v61 }
 0x199   :  { %v1139_v3 = vld [vmem:[#allocation2 + $0x8] sm:$0xff] }
 0x19a   :  { %1351 = vmatmul.bf16.vlgmr.msrb.gmra.mxu0 %v1144_v1  ;;  %v1142_v4 = vld [vmem:[#allocation2 + $0x38] sm:$0x3f]  ;;  %1412 = vst.msk [vmem:[#allocation2 + $0xd] sm:$0x1] %vm1396_vm4, %v2556_v0 }
 0x19b   :  { %v1145_v5 = vpack.c.bf16 %v1142_v4, %v1139_v3  ;;  %1439 = vst.msk [vmem:[#allocation2 + $0x3b] sm:$0x1] %vm1396_vm4, %v2556_v0  ;;  %v1140_v6 = vld [vmem:[#allocation2 + $0x10] sm:$0xff]  ;;  %vm1685_vm4 = vcmask 261120  }
 0x19c   :  { %v1143_v2 = vld [vmem:[#allocation2 + $0x40] sm:$0x3f] }
 0x19d   :  { %1365 = vmatmul.bf16.vlgmr.msrb.gmra.mxu1 %v1145_v5  ;;  %v1146_v62 = vpack.c.bf16 %v1143_v2, %v1140_v6 }
 0x19f   :  { %1379 = vmatmul.bf16.vlgmr.msrb.gmra.mxu2 %v1146_v62 }
 0x217   :  { %v1352_v0 = vpop.f32.mrf.mxu0 }
 0x218   :  { %v1353_v14 = vadd.f32 %v2496_v11, %v1352_v0 }
 0x21a   :  { %v1366_v13 = vpop.f32.mrf.mxu1 }
 0x21b   :  { %v1367_v7 = vadd.f32 %v1366_v13, %v1353_v14 }
 0x21f   :  { %v1354_v16 = vpop.f32.mrf.mxu0 }
 0x220   :  { %v1355_v20 = vadd.f32 %v2496_v11, %v1354_v16  ;;  %v1671_v16 = vld [vmem:[%s3240_s9 + $0x78] sm:$0xff] }
 0x221   :  { %1688 = vmatpush.msra.mxu1 %v1671_v16 }
 0x222   :  { %v1380_v17 = vpop.f32.mrf.mxu2  ;;  %v1368_v22 = vpop.f32.mrf.mxu1 }
 0x223   :  { %v1381_v19 = vadd.f32 %v1380_v17, %v1367_v7  ;;  %v1369_v25 = vadd.f32 %v1368_v22, %v1355_v20  ;;  %v1670_v17 = vld [vmem:[%s3240_s9 + $0x70] sm:$0xff]  ;;  %v1667_v20 = vld [vmem:[%s3240_s9 + $0x58] sm:$0xff]  ;;  %v1665_v22 = vld [vmem:[%s3240_s9 + $0x48] sm:$0xff] }
 0x224   :  { %1689 = vmatpush.msra.mxu1 %v1670_v17 }
 0x225   :  { %v1385_v21 = vmax.f32 %v1381_v19, 0.0  ;;  %v1668_v19 = vld [vmem:[%s3240_s9 + $0x60] sm:$0xff] }
 0x226   :  { %1690 = vmatpush.msra.mxu1 %v1669_v18 }
 0x227   :  { %v1388_v24 = vrot.slane %v1385_v21, 1 }
 0x228   :  { %1691 = vmatpush.msra.mxu1 %v1668_v19 }
 0x229   :  { %v1390_v26 = vmax.f32 %v1385_v21, %v1388_v24  ;;  %v1663_v24 = vld [vmem:[%s3240_s9 + $0x38] sm:$0xff] }
 0x22a   :  { %v1382_v27 = vpop.f32.mrf.mxu2  ;;  %1692 = vmatpush.msra.mxu1 %v1667_v20 }
 0x22b   :  { %v1383_v28 = vadd.f32 %v1382_v27, %v1369_v25  ;;  %1403 = vrot.lane.b32.xlu0 %v1390_v26, %s2554_s23  ;;  %v1399_v29 = vrot.slane %v1390_v26, 7  ;;  %v1408_v30 = vrot.slane %v1390_v26, 1  ;;  %v1662_v25 = vld [vmem:[%s3240_s9 + $0x30] sm:$0xff]  ;;  %v1661_v26 = vld [vmem:[%s3240_s9 + $0x28] sm:$0xff] }
 0x22d   :  { %v1386_v31 = vmax.f32 %v1383_v28, 0.0  ;;  %1411 = vst.msk [vmem:[#allocation2 + $0x8] sm:$0x1f] %vm1410_vm5, %v1408_v30  ;;  %v1660_v28 = vld [vmem:[%s3240_s9 + $0x20] sm:$0xff]  ;;  %v1675_v30 = vld [vmem:[%s3240_s9 + $0x98] sm:$0xff]  ;;  %vm1773_vm5 = vcmask 1043456  }
 0x22e   :  { %1402 = vst.msk [vmem:[#allocation2] sm:$0x3e] %vm1401_vm6, %v1399_v29  ;;  %1720 = vmatpush.msra.mxu2 %v1675_v30  ;;  %vm1735_vm6 = vcmask 146432  }
 0x22f   :  { %v1392_v32 = vrot.slane %v1386_v31, 1 }
 0x231   :  { %v1394_v33 = vmax.f32 %v1385_v21, %v1392_v32  ;;  %v1395_v34 = vmax.f32 %v1386_v31, %v1392_v32  ;;  %v1666_v21 = vld [vmem:[%s3240_s9 + $0x50] sm:$0xff]  ;;  %v1659_v32 = vld [vmem:[%s3240_s9 + $0x18] sm:$0xff] }
 0x232   :  { %1693 = vmatpush.msra.mxu1 %v1666_v21  ;;  %v1674_v31 = vld [vmem:[%s3240_s9 + $0x90] sm:$0xff] }
 0x233   :  { %1415 = vst.msk [vmem:[#allocation2] sm:$0x80] %vm1414_vm7, %v1394_v33  ;;  %v1433_v35 = vrot.slane %v1395_v34, 2  ;;  %v1421_v36 = vrot.slane %v1395_v34, 1  ;;  %v1420_v37 = vrot.slane %v1394_v33, 1  ;;  %v1658_v33 = vld [vmem:[%s3240_s9 + $0x10] sm:$0xff]  ;;  %1721 = vmatpush.msra.mxu2 %v1674_v31 }
 0x234   :  { %1417 = vst.msk [vmem:[#allocation2 + $0x30] sm:$0xf] %vm1416_vm8, %v1395_v34  ;;  %1694 = vmatpush.msra.mxu1 %v1665_v22  ;;  %v1673_v34 = vld [vmem:[%s3240_s9 + $0x88] sm:$0xff]  ;;  %vm1769_vm7 = vcmask 97280   ;;  %vm1797_vm8 = vcmask 41984  }
 0x235   :  { %1436 = vst.msk [vmem:[#allocation2 + $0x8] sm:$0xc0] %vm1435_vm9, %v1433_v35  ;;  %1425 = vrot.lane.b32.xlu1 %v1421_v36, %s2554_s23  ;;  %v1422_v38 = vsel %vm82_vm1, %v1420_v37, %v1421_v36  ;;  %v1672_v36 = vld [vmem:[%s3240_s9 + $0x80] sm:$0xff]  ;;  %1722 = vmatpush.msra.mxu2 %v1673_v34 }
 0x236   :  { %1438 = vst.msk [vmem:[#allocation2 + $0x38] sm:$0x7] %vm1437_vm10, %v1433_v35  ;;  %1423 = vrot.lane.b32.xlu0 %v1422_v38, %s2554_s23  ;;  %1695 = vmatpush.msra.mxu1 %v1664_v23  ;;  %v1657_v35 = vld [vmem:[%s3240_s9 + $0x8] sm:$0xff]  ;;  %v1656_v37 = vld [vmem:[%s3240_s9] sm:$0xff]  ;;  %v1730_v38 = vld [vmem:[%s3242_s11 + $0x10] sm:$0x3] }
 0x237   :  { %1723 = vmatpush.msra.mxu2 %v1672_v36  ;;  %2352 = vmatpush.msk.msra.mxu3 %vm1739_vm2, %v1730_v38 }
 0x238   :  { %1696 = vmatpush.msra.mxu1 %v1663_v24 }
 0x23a   :  { %1697 = vmatpush.msra.mxu1 %v1662_v25 }
 0x23c   :  { %v1441_v39 = vld [vmem:[#allocation2 + $0x8] sm:$0xff]  ;;  %1698 = vmatpush.msra.mxu1 %v1661_v26 }
 0x23d   :  { %v1443_v40 = vld [vmem:[#allocation2 + $0x38] sm:$0xf] }
 0x23e   :  { %v1445_v41 = vpack.c.bf16 %v1443_v40, %v1441_v39  ;;  %1699 = vmatpush.msra.mxu1 %v1660_v28  ;;  %v1729_v39 = vld [vmem:[%s3242_s11 + $0x8] sm:$0xff] }
 0x23f   :  { %1757 = vmatpush.msra.mxu3 %v1729_v39 }
 0x240   :  { %2346 = vmatmul.msk.bf16.vlgmr.msra.gmra.mxu0 %vm1546_vm11, %v1445_v41  ;;  %1700 = vmatpush.msra.mxu1 %v1659_v32 }
 0x242   :  { %1701 = vmatpush.msra.mxu1 %v1658_v33 }
 0x244   :  { %1702 = vmatpush.msra.mxu1 %v1657_v35 }
 0x246   :  { %1703 = vmatpush.msra.mxu1 %v1656_v37 }
 0x29d   :  { %v1404_v47 = vpop.permute.xlu0 %1403 }
 0x29e   :  { %1407 = vst.msk [vmem:[#allocation2] sm:$0x3f] %vm1406_vm12, %v1404_v47  ;;  %v1728_v47 = vld [vmem:[%s3242_s11] sm:$0xff] }
 0x29f   :  { %1758 = vmatpush.msra.mxu3 %v1728_v47 }
 0x2a7   :  { %v1426_v48 = vpop.permute.xlu1 %1425 }
 0x2a8   :  { %1432 = vst.msk [vmem:[#allocation2 + $0x30] sm:$0xf] %vm1431_vm13, %v1426_v48  ;;  %v1424_v49 = vpop.permute.xlu0 %1423  ;;  %v1764_v48 = vld [vmem:[%s3244_s13 + $0x8] sm:$0xf] }
 0x2a9   :  { %1430 = vst.msk [vmem:[#allocation2] sm:$0xc0] %vm1429_vm14, %v1424_v49  ;;  %v1763_v49 = vld [vmem:[%s3244_s13] sm:$0xff]  ;;  %2354 = vmatpush.msk.msrb.mxu2 %vm1773_vm5, %v1764_v48 }
 0x2ab   :  { %1792 = vmatpush.msrb.mxu2 %v1763_v49 }
 0x2af   :  { %v1442_v50 = vld [vmem:[#allocation2 + $0x30] sm:$0xf] }
 0x2b0   :  { %v1440_v51 = vld [vmem:[#allocation2] sm:$0xff] }
 0x2b1   :  { %v1444_v52 = vpack.c.bf16 %v1442_v50, %v1440_v51  ;;  %v2498_v50 = vld [vmem:[%s3241_s10] ss:$0 sm:$0xff]  ;;  %s1804_s10 = sshll.u32 %s2559_s30, 4  ;;  %s1805_s10 = int_to_ptr.vmem [resolvable:$true] %s1804_s10 }
 0x2b3   :  { %1558 = vmatmul.bf16.vlgmr.msrb.gmra.mxu3 %v1444_v52 }
 0x2bd   :  { %v1573_v55 = vpop.f32.mrf.mxu0 }
 0x2c5   :  { %v1575_v1 = vpop.f32.mrf.mxu0 }
 0x336   :  { %v1559_v56 = vpop.f32.mrf.mxu3 }
 0x337   :  { %v1560_v53 = vadd.f32 %v2497_v54, %v1559_v56  ;;  %v2499_v56 = vld [vmem:[%s3243_s12] ss:$0 sm:$0xff] }
 0x339   :  { %v1574_v57 = vadd.f32 %v1573_v55, %v1560_v53 }
 0x33b   :  { %v1578_v58 = vmax.f32 %v1574_v57, 0.0 }
 0x33d   :  { %v1581_v59 = vrot.slane %v1578_v58, 1 }
 0x33e   :  { %v1561_v60 = vpop.f32.mrf.mxu3 }
 0x33f   :  { %v1583_v61 = vmax.f32 %v1578_v58, %v1581_v59  ;;  %v1562_v63 = vadd.f32 %v2497_v54, %v1561_v60 }
 0x341   :  { %1601 = vst.sshfl [vmem:[#allocation1] sm:$0xff pattern:$0x73625140] %v1583_v61  ;;  %v1576_v3 = vadd.f32 %v1575_v1, %v1562_v63  ;;  %v2347_v4 = vrot.slane %v1583_v61, 9 }
 0x342   :  { %1592 = vst.msk [vmem:[#allocation3] sm:$0x1] %vm1591_vm15, %v1583_v61 }
 0x343   :  { %v1579_v5 = vmax.f32 %v1576_v3, 0.0  ;;  %1596 = vrot.lane.b32.xlu1 %v2347_v4, %s2557_s7 }
 0x345   :  { %v1585_v6 = vrot.slane %v1579_v5, 1 }
 0x347   :  { %v1590_v2 = vmax.f32 %v1579_v5, %v1585_v6  ;;  %v1586_v10 = vsel %vm82_vm1, %v1581_v59, %v1585_v6  ;;  %vm1607_vm1 = vcmask 778752  }
 0x348   :  { %v1603_v62 = vld [vmem:[#allocation1 + $0x1] ss:$4 sm:$0xff]  ;;  %v1589_v0 = vmax.f32 %v1578_v58, %v1586_v10  ;;  %v2500_v58 = vld [vmem:[%s3245_s14] ss:$0 sm:$0xff] }
 0x349   :  { %1640 = vrot.lane.b32.xlu0 %v1590_v2, %s2554_s23  ;;  %1604 = vrot.lane.b32.xlu2 %v1603_v62, %s2554_s23  ;;  %1609 = vst.sshfl [vmem:[#allocation1] sm:$0xff pattern:$0x73625140] %v1583_v61  ;;  %v2350_v7 = vrot.slane %v1590_v2, 9 }
 0x350   :  { %v1611_v8 = vld [vmem:[#allocation1 + $0x1] ss:$4 sm:$0xff] }
 0x351   :  { %v2348_v9 = vrot.slane %v1611_v8, 9  ;;  %1619 = vst.sshfl [vmem:[#allocation1] sm:$0xff pattern:$0x73625140] %v1583_v61 }
 0x353   :  { %1614 = vrot.lane.b32.xlu1 %v2348_v9, %s2558_s8 }
 0x358   :  { %v1621_v11 = vld [vmem:[#allocation1 + $0x2] ss:$4 sm:$0xff] }
 0x359   :  { %1625 = vst.sshfl [vmem:[#allocation1] sm:$0xff pattern:$0x73625140] %v1589_v0 }
 0x35a   :  { %1623 = vst.msk [vmem:[#allocation3 + $0x2] sm:$0x1] %vm1591_vm15, %v1621_v11 }
 0x360   :  { %v1627_v12 = vld [vmem:[#allocation1 + $0x3] ss:$4 sm:$0xff] }
 0x361   :  { %1630 = vst.sshfl [vmem:[#allocation1] sm:$0xff pattern:$0x73625140] %v1589_v0 }
 0x362   :  { %1629 = vst.msk [vmem:[#allocation3 + $0x1] sm:$0x1] %vm1591_vm15, %v1627_v12 }
 0x368   :  { %v1632_v13 = vld [vmem:[#allocation1 + $0x3] ss:$4 sm:$0xff] }
 0x369   :  { %v2349_v14 = vrot.slane %v1632_v13, 9  ;;  %1650 = vst.sshfl [vmem:[#allocation1] sm:$0xff pattern:$0x73625140] %v1590_v2 }
 0x36b   :  { %1635 = vrot.lane.b32.xlu2 %v2349_v14, %s2557_s7 }
 0x370   :  { %v1652_v15 = vld [vmem:[#allocation1 + $0x1] ss:$4 sm:$0xff] }
 0x371   :  { %1654 = vst.msk [vmem:[#allocation3 + $0x3] sm:$0x1] %vm1591_vm15, %v1652_v15 }
 0x373   :  { %1646 = vrot.lane.b32.xlu2 %v2350_v7, %s2558_s8 }
 0x3a3   :  { %v1605_v29 = vpop.permute.xlu2 %1604 }
 0x3b5   :  { %v1597_v27 = vpop.permute.xlu1 %1596 }
 0x3b6   :  { %1600 = vst.msk [vmem:[#allocation3] sm:$0x1] %vm1599_vm0, %v1597_v27 }
 0x3b7   :  { %1608 = vst.msk [vmem:[#allocation3] sm:$0x1] %vm1607_vm1, %v1605_v29 }
 0x3bb   :  { %v1641_v42 = vpop.permute.xlu0 %1640 }
 0x3c5   :  { %v1636_v40 = vpop.permute.xlu2 %1635  ;;  %v1615_v41 = vpop.permute.xlu1 %1614 }
 0x3c6   :  { %1638 = vst.msk [vmem:[#allocation3 + $0x1] sm:$0x1] %vm1599_vm0, %v1636_v40 }
 0x3c7   :  { %1618 = vst.msk [vmem:[#allocation3] sm:$0x1] %vm1617_vm3, %v1615_v41 }
 0x3c8   :  { %1643 = vst.msk [vmem:[#allocation3 + $0x1] sm:$0x1] %vm1607_vm1, %v1641_v42 }
 0x3cd   :  { %v1647_v43 = vpop.permute.xlu2 %1646 }
 0x3ce   :  { %1649 = vst.msk [vmem:[#allocation3 + $0x1] sm:$0x1] %vm1617_vm3, %v1647_v43 }
 0x3d5   :  { %v1655_v44 = vld [vmem:[#allocation3] sm:$0xf] }
 0x3d6   :  { %1681 = vst [vmem:[#allocation1] ss:$4 sm:$0xff] %v1655_v44 }
 0x3dd   :  { %v1682_v45 = vld.sshfl [vmem:[#allocation1] sm:$0xff pattern:$0x73625140]  ;;  %v1683_v46 = vld.sshfl [vmem:[#allocation1 + $0x8] sm:$0xff pattern:$0x73625140] }
 0x3de   :  { %1704 = vmatmul.f32.vlgmr.msra.gmra.mxu1 %v1682_v45  ;;  %2351 = vmatmul.msk.f32.vlgmr.msra.gmra.mxu2 %vm1685_vm4, %v1683_v46 }
 0x45b   :  { %v1705_v51 = vpop.f32.mrf.mxu1 }
 0x45c   :  { %v1706_v52 = vadd.f32 %v2498_v50, %v1705_v51 }
 0x461   :  { %v1725_v54 = vpop.f32.mrf.mxu2 }
 0x462   :  { %v1726_v55 = vadd.f32 %v1725_v54, %v1706_v52 }
 0x464   :  { %2353 = vmatmul.msk.f32.vlgmr.msra.gmra.mxu3 %vm1735_vm6, %v1726_v55 }
 0x4e7   :  { %v1760_v53 = vpop.f32.mrf.mxu3 }
 0x4e8   :  { %v1761_v57 = vadd.f32 %v2499_v56, %v1760_v53 }
 0x4ea   :  { %2355 = vmatmul.msk.f32.vlgmr.msrb.gmra.mxu2 %vm1769_vm7, %v1761_v57 }
 0x56d   :  { %v1794_v59 = vpop.f32.mrf.mxu2 }
 0x56e   :  { %v1795_v60 = vadd.f32 %v2500_v58, %v1794_v59 }
 0x570   :  { %1798 = vst.msk [vmem:[#allocation7] sm:$0x3] %vm1797_vm8, %v1795_v60 }
 0x571   :  { %1809 = dma.vmem_to_hbm [thread:$0]  %s1805_s10, 32, %s1807_s6, [#allocation6]  }
 0x572   :  { %2551 = dma.done.wait [#allocation6], 32  }
 0x573   :  { %2552 = vsyncadd [#allocation6], 4294967264 }
 0x574   :  { %1814 = vsyncpa [#allocation5], 1 }
 0x575   :  { %1815 = vsyncpa [#allocation6], 1 }

</bundles_post_ra>
